<compile_context>
chip_gen: v7x
topology: tpu7x:2x2x1
jax: 0.10.0
libtpu: 0.0.40
codegen_flags: <defaults>
</compile_context>

<pallas_src>
import jax
import jax.numpy as jnp
from jax.experimental import pallas as pl
from jax.experimental.pallas import tpu as pltpu

H_DIM = 400          # PyTorch h_dim
IN_DIM = 2
OUT_DIM = 1

# Padded (TPU-aligned) sizes.
IN_PAD = 8           # 2 -> 8   (sublane-aligned K for layer 1; full-dim block)
H_PAD = 512          # 400 -> 512 (lane-aligned)
OUT_PAD = 128        # 1 -> 128   (lane-dense output slab)
MAX_TB = 256         # batch-tile cap: fills MXU rows on v5e (128) and v6e/v7x (256)


def _round_up(n, m):
    return ((n + m - 1) // m) * m


def _disc_kernel(x_ref,
                 w1_ref, b1_ref,
                 w2_ref, b2_ref,
                 w3_ref, b3_ref,
                 w4_ref, b4_ref,
                 o_ref):
    """One batch tile of the 4-layer MLP, entirely in VMEM.  Emits logits."""
    bf16 = jnp.bfloat16

    h = jnp.dot(x_ref[...].astype(bf16), w1_ref[...],
                preferred_element_type=jnp.float32)
    h = jnp.maximum(h + b1_ref[...], 0.0)                       # (TB, H_PAD)

    h = jnp.dot(h.astype(bf16), w2_ref[...],
                preferred_element_type=jnp.float32)
    h = jnp.maximum(h + b2_ref[...], 0.0)

    h = jnp.dot(h.astype(bf16), w3_ref[...],
                preferred_element_type=jnp.float32)
    h = jnp.maximum(h + b3_ref[...], 0.0)

    logit = jnp.dot(h.astype(bf16), w4_ref[...],
                    preferred_element_type=jnp.float32)
    o_ref[...] = logit + b4_ref[...]                            # (TB, OUT_PAD)


def pad_params(params):
    """Pad params ONCE to TPU-aligned shapes (weights bf16, biases f32).

    Zero padding is mathematically inert (padded weight rows/cols and biases
    are zero, ReLU(0) = 0) and is hoisted out of the per-call forward path.
    """
    w1, b1, w2, b2, w3, b3, w4, b4 = params

    def pad_w(w, rows, cols):
        wp = jnp.zeros((rows, cols), jnp.float32)
        wp = wp.at[:w.shape[0], :w.shape[1]].set(w)
        return wp.astype(jnp.bfloat16)

    def pad_b(b, cols):
        return jnp.zeros((1, cols), jnp.float32).at[0, :b.shape[0]].set(b)

    return (pad_w(w1, IN_PAD, H_PAD), pad_b(b1, H_PAD),
            pad_w(w2, H_PAD, H_PAD), pad_b(b2, H_PAD),
            pad_w(w3, H_PAD, H_PAD), pad_b(b3, H_PAD),
            pad_w(w4, H_PAD, OUT_PAD), pad_b(b4, OUT_PAD))


@jax.jit
def discriminator_forward(x, padded_params):
    """x: (B, 2) float32.  Returns (B,) float32, matching output.view(-1)."""
    w1p, b1p, w2p, b2p, w3p, b3p, w4p, b4p = padded_params
    B = x.shape[0]
    tb = min(MAX_TB, _round_up(max(B, 1), 8))      # static at trace time
    B_pad = _round_up(B, tb)

    # Only the (tiny) input needs per-call padding; padded rows/lanes are inert.
    xp = jnp.zeros((B_pad, IN_PAD), jnp.float32).at[:B, :IN_DIM].set(x)

    full = lambda shape: pl.BlockSpec(shape, lambda i: (0, 0))

    logits = pl.pallas_call(
        _disc_kernel,
        out_shape=jax.ShapeDtypeStruct((B_pad, OUT_PAD), jnp.float32),
        grid=(B_pad // tb,),
        in_specs=[
            pl.BlockSpec((tb, IN_PAD), lambda i: (i, 0)),   # x tile
            full((IN_PAD, H_PAD)), full((1, H_PAD)),        # layer 1
            full((H_PAD, H_PAD)),  full((1, H_PAD)),        # layer 2
            full((H_PAD, H_PAD)),  full((1, H_PAD)),        # layer 3
            full((H_PAD, OUT_PAD)), full((1, OUT_PAD)),     # layer 4
        ],
        out_specs=pl.BlockSpec((tb, OUT_PAD), lambda i: (i, 0)),
        compiler_params=pltpu.CompilerParams(
            dimension_semantics=("parallel",)),
    )(xp, w1p, b1p, w2p, b2p, w3p, b3p, w4p, b4p)

    # Column 0 holds the real logit; apply sigmoid once per real row only.
    return jax.nn.sigmoid(logits[:B, 0])


def init_params(key):
    """Deterministic init mimicking PyTorch nn.Linear default (U[-1/sqrt(fan_in), +])."""
    dims = [(IN_DIM, H_DIM), (H_DIM, H_DIM), (H_DIM, H_DIM), (H_DIM, OUT_DIM)]
    params = []
    for (fan_in, fan_out) in dims:
        key, kw, kb = jax.random.split(key, 3)
        bound = 1.0 / jnp.sqrt(fan_in)
        w = jax.random.uniform(kw, (fan_in, fan_out), jnp.float32, -bound, bound)
        b = jax.random.uniform(kb, (fan_out,), jnp.float32, -bound, bound)
        params += [w, b]
    return tuple(params)


def _reference_forward_bf16(x, params):
    """Pure-JAX reference using the same bf16-operand / f32-accumulate math."""
    w1, b1, w2, b2, w3, b3, w4, b4 = params
    bf16 = jnp.bfloat16

    def layer(h, w, b, relu):
        y = jnp.dot(h.astype(bf16), w.astype(bf16),
                    preferred_element_type=jnp.float32) + b
        return jnp.maximum(y, 0.0) if relu else y

    h = layer(x, w1, b1, True)
    h = layer(h, w2, b2, True)
    h = layer(h, w3, b3, True)
    return jax.nn.sigmoid(layer(h, w4, b4, False)).reshape(-1)


def _reference_forward_f32(x, params):
    """Full-f32 reference (PyTorch semantics) for a looser sanity check."""
    w1, b1, w2, b2, w3, b3, w4, b4 = params
    h = jnp.maximum(x @ w1 + b1, 0.0)
    h = jnp.maximum(h @ w2 + b2, 0.0)
    h = jnp.maximum(h @ w3 + b3, 0.0)
    return jax.nn.sigmoid(h @ w4 + b4).reshape(-1)


if __name__ == "__main__":
    key = jax.random.PRNGKey(0)
    kp, kx1, kx2 = jax.random.split(key, 3)
    params = init_params(kp)
    padded_params = pad_params(params)   # padded/bf16-cast once, reused per call

    for B, kx in ((8, kx1), (200, kx2)):
        x = jax.random.normal(kx, (B, IN_DIM), jnp.float32)

        out = jax.block_until_ready(discriminator_forward(x, padded_params))
        assert out.shape == (B,)

        ref_bf16 = _reference_forward_bf16(x, params)
        assert jnp.allclose(out, ref_bf16, atol=1e-3, rtol=1e-3), (
            float(jnp.max(jnp.abs(out - ref_bf16))))

        ref_f32 = _reference_forward_f32(x, params)
        assert jnp.allclose(out, ref_f32, atol=5e-2), (
            float(jnp.max(jnp.abs(out - ref_f32))))

    print("KERNEL_OK")
</pallas_src>

<mosaic_0001>
module attributes {stable_mosaic.version = 11 : i64} {
  func.func @_disc_kernel(%arg0: i32, %arg1: memref<8x8xf32, #tpu.memory_space<vmem>>, %arg2: memref<8x512xbf16, #tpu.memory_space<vmem>>, %arg3: memref<1x512xf32, #tpu.memory_space<vmem>>, %arg4: memref<512x512xbf16, #tpu.memory_space<vmem>>, %arg5: memref<1x512xf32, #tpu.memory_space<vmem>>, %arg6: memref<512x512xbf16, #tpu.memory_space<vmem>>, %arg7: memref<1x512xf32, #tpu.memory_space<vmem>>, %arg8: memref<512x128xbf16, #tpu.memory_space<vmem>>, %arg9: memref<1x128xf32, #tpu.memory_space<vmem>>, %arg10: memref<8x128xf32, #tpu.memory_space<vmem>>) attributes {dimension_semantics = [#tpu.dimension_semantics<parallel>], iteration_bounds = array<i64: 1>, scalar_prefetch = 0 : i64, scratch_operands = 0 : i64, tpu.core_type = #tpu.core_type<tc>, window_params = [{transform_indices = @transform_0, window_bounds = array<i64: 8, 8>}, {pipeline_mode = #tpu.pipeline_mode<synchronous>, transform_indices = @transform_1, window_bounds = array<i64: 8, 512>}, {pipeline_mode = #tpu.pipeline_mode<synchronous>, transform_indices = @transform_2, window_bounds = array<i64: 1, 512>}, {pipeline_mode = #tpu.pipeline_mode<synchronous>, transform_indices = @transform_3, window_bounds = array<i64: 512, 512>}, {pipeline_mode = #tpu.pipeline_mode<synchronous>, transform_indices = @transform_4, window_bounds = array<i64: 1, 512>}, {pipeline_mode = #tpu.pipeline_mode<synchronous>, transform_indices = @transform_5, window_bounds = array<i64: 512, 512>}, {pipeline_mode = #tpu.pipeline_mode<synchronous>, transform_indices = @transform_6, window_bounds = array<i64: 1, 512>}, {pipeline_mode = #tpu.pipeline_mode<synchronous>, transform_indices = @transform_7, window_bounds = array<i64: 512, 128>}, {pipeline_mode = #tpu.pipeline_mode<synchronous>, transform_indices = @transform_8, window_bounds = array<i64: 1, 128>}, {transform_indices = @transform_9, window_bounds = array<i64: 8, 128>}]} {
    %c0 = arith.constant 0 : index
    %c0_0 = arith.constant 0 : index
    %0 = vector.load %arg1[%c0, %c0_0] : memref<8x8xf32, #tpu.memory_space<vmem>>, vector<8x8xf32>
    %1 = arith.truncf %0 : vector<8x8xf32> to vector<8x8xbf16>
    %c0_1 = arith.constant 0 : index
    %c0_2 = arith.constant 0 : index
    %2 = vector.load %arg2[%c0_1, %c0_2] : memref<8x512xbf16, #tpu.memory_space<vmem>>, vector<8x512xbf16>
    %cst = arith.constant dense<0.000000e+00> : vector<8x512xf32>
    %3 = tpu.matmul %1, %2, %cst {dimension_numbers = #tpu.dot_dimension_numbers<[1], [0], [0], [1], [0, 0, 1, 1], [], []>} : vector<8x8xbf16>, vector<8x512xbf16>, vector<8x512xf32> -> vector<8x512xf32>
    %c0_3 = arith.constant 0 : index
    %c0_4 = arith.constant 0 : index
    %4 = vector.load %arg3[%c0_3, %c0_4] : memref<1x512xf32, #tpu.memory_space<vmem>>, vector<1x512xf32>
    %5 = vector.broadcast %4 : vector<1x512xf32> to vector<8x512xf32>
    %6 = arith.addf %3, %5 : vector<8x512xf32>
    %cst_5 = arith.constant 0.000000e+00 : f32
    %7 = vector.broadcast %cst_5 : f32 to vector<8x512xf32>
    %8 = arith.maximumf %6, %7 : vector<8x512xf32>
    %9 = arith.truncf %8 : vector<8x512xf32> to vector<8x512xbf16>
    %c0_6 = arith.constant 0 : index
    %c0_7 = arith.constant 0 : index
    %10 = vector.load %arg4[%c0_6, %c0_7] : memref<512x512xbf16, #tpu.memory_space<vmem>>, vector<512x512xbf16>
    %cst_8 = arith.constant dense<0.000000e+00> : vector<8x512xf32>
    %11 = tpu.matmul %9, %10, %cst_8 {dimension_numbers = #tpu.dot_dimension_numbers<[1], [0], [0], [1], [0, 0, 1, 1], [], []>} : vector<8x512xbf16>, vector<512x512xbf16>, vector<8x512xf32> -> vector<8x512xf32>
    %c0_9 = arith.constant 0 : index
    %c0_10 = arith.constant 0 : index
    %12 = vector.load %arg5[%c0_9, %c0_10] : memref<1x512xf32, #tpu.memory_space<vmem>>, vector<1x512xf32>
    %13 = vector.broadcast %12 : vector<1x512xf32> to vector<8x512xf32>
    %14 = arith.addf %11, %13 : vector<8x512xf32>
    %cst_11 = arith.constant 0.000000e+00 : f32
    %15 = vector.broadcast %cst_11 : f32 to vector<8x512xf32>
    %16 = arith.maximumf %14, %15 : vector<8x512xf32>
    %17 = arith.truncf %16 : vector<8x512xf32> to vector<8x512xbf16>
    %c0_12 = arith.constant 0 : index
    %c0_13 = arith.constant 0 : index
    %18 = vector.load %arg6[%c0_12, %c0_13] : memref<512x512xbf16, #tpu.memory_space<vmem>>, vector<512x512xbf16>
    %cst_14 = arith.constant dense<0.000000e+00> : vector<8x512xf32>
    %19 = tpu.matmul %17, %18, %cst_14 {dimension_numbers = #tpu.dot_dimension_numbers<[1], [0], [0], [1], [0, 0, 1, 1], [], []>} : vector<8x512xbf16>, vector<512x512xbf16>, vector<8x512xf32> -> vector<8x512xf32>
    %c0_15 = arith.constant 0 : index
    %c0_16 = arith.constant 0 : index
    %20 = vector.load %arg7[%c0_15, %c0_16] : memref<1x512xf32, #tpu.memory_space<vmem>>, vector<1x512xf32>
    %21 = vector.broadcast %20 : vector<1x512xf32> to vector<8x512xf32>
    %22 = arith.addf %19, %21 : vector<8x512xf32>
    %cst_17 = arith.constant 0.000000e+00 : f32
    %23 = vector.broadcast %cst_17 : f32 to vector<8x512xf32>
    %24 = arith.maximumf %22, %23 : vector<8x512xf32>
    %25 = arith.truncf %24 : vector<8x512xf32> to vector<8x512xbf16>
    %c0_18 = arith.constant 0 : index
    %c0_19 = arith.constant 0 : index
    %26 = vector.load %arg8[%c0_18, %c0_19] : memref<512x128xbf16, #tpu.memory_space<vmem>>, vector<512x128xbf16>
    %cst_20 = arith.constant dense<0.000000e+00> : vector<8x128xf32>
    %27 = tpu.matmul %25, %26, %cst_20 {dimension_numbers = #tpu.dot_dimension_numbers<[1], [0], [0], [1], [0, 0, 1, 1], [], []>} : vector<8x512xbf16>, vector<512x128xbf16>, vector<8x128xf32> -> vector<8x128xf32>
    %c0_21 = arith.constant 0 : index
    %c0_22 = arith.constant 0 : index
    %28 = vector.load %arg9[%c0_21, %c0_22] : memref<1x128xf32, #tpu.memory_space<vmem>>, vector<1x128xf32>
    %29 = vector.broadcast %28 : vector<1x128xf32> to vector<8x128xf32>
    %30 = arith.addf %27, %29 : vector<8x128xf32>
    %c0_23 = arith.constant 0 : index
    %c0_24 = arith.constant 0 : index
    %31 = vector.load %arg10[%c0_23, %c0_24] : memref<8x128xf32, #tpu.memory_space<vmem>>, vector<8x128xf32>
    tpu.vector_store %arg10[%c0_23, %c0_24], %30 {strides = array<i32>} : memref<8x128xf32, #tpu.memory_space<vmem>>, vector<8x128xf32>,
    return
  }
  func.func @transform_0(%arg0: i32) -> (i32, i32) {
    %c0_i32 = arith.constant 0 : i32
    %c0_i32_0 = arith.constant 0 : i32
    return %arg0, %c0_i32 : i32, i32
  }
  func.func @transform_1(%arg0: i32) -> (i32, i32) {
    %c0_i32 = arith.constant 0 : i32
    %c0_i32_0 = arith.constant 0 : i32
    %c0_i32_1 = arith.constant 0 : i32
    return %c0_i32, %c0_i32_0 : i32, i32
  }
  func.func @transform_2(%arg0: i32) -> (i32, i32) {
    %c0_i32 = arith.constant 0 : i32
    %c0_i32_0 = arith.constant 0 : i32
    %c0_i32_1 = arith.constant 0 : i32
    return %c0_i32, %c0_i32_0 : i32, i32
  }
  func.func @transform_3(%arg0: i32) -> (i32, i32) {
    %c0_i32 = arith.constant 0 : i32
    %c0_i32_0 = arith.constant 0 : i32
    %c0_i32_1 = arith.constant 0 : i32
    return %c0_i32, %c0_i32_0 : i32, i32
  }
  func.func @transform_4(%arg0: i32) -> (i32, i32) {
    %c0_i32 = arith.constant 0 : i32
    %c0_i32_0 = arith.constant 0 : i32
    %c0_i32_1 = arith.constant 0 : i32
    return %c0_i32, %c0_i32_0 : i32, i32
  }
  func.func @transform_5(%arg0: i32) -> (i32, i32) {
    %c0_i32 = arith.constant 0 : i32
    %c0_i32_0 = arith.constant 0 : i32
    %c0_i32_1 = arith.constant 0 : i32
    return %c0_i32, %c0_i32_0 : i32, i32
  }
  func.func @transform_6(%arg0: i32) -> (i32, i32) {
    %c0_i32 = arith.constant 0 : i32
    %c0_i32_0 = arith.constant 0 : i32
    %c0_i32_1 = arith.constant 0 : i32
    return %c0_i32, %c0_i32_0 : i32, i32
  }
  func.func @transform_7(%arg0: i32) -> (i32, i32) {
    %c0_i32 = arith.constant 0 : i32
    %c0_i32_0 = arith.constant 0 : i32
    %c0_i32_1 = arith.constant 0 : i32
    return %c0_i32, %c0_i32_0 : i32, i32
  }
  func.func @transform_8(%arg0: i32) -> (i32, i32) {
    %c0_i32 = arith.constant 0 : i32
    %c0_i32_0 = arith.constant 0 : i32
    %c0_i32_1 = arith.constant 0 : i32
    return %c0_i32, %c0_i32_0 : i32, i32
  }
  func.func @transform_9(%arg0: i32) -> (i32, i32) {
    %c0_i32 = arith.constant 0 : i32
    %c0_i32_0 = arith.constant 0 : i32
    return %arg0, %c0_i32 : i32, i32
  }
}

</mosaic_0001>

<bundles_post_ra>
// kernel: discriminator_forward.1
= control target key start
LH: loop header
LB: loop body
LE: loop exit
PB: predicated region body
PF: predicated region fallthrough
CT: control target
= control target key end

     0   :  { %14 = vsyncpa [#allocation3], 0  ;;  %s3523_s0 = inlined_call_operand.vmem [shape: f32[8,8], index: 0, kind: input, shape index: {}]   ;;  %s3524_s1 = inlined_call_operand.vmem [shape: bf16[8,512], index: 1, kind: input, shape index: {}]   ;;  %s3525_s2 = inlined_call_operand.vmem [shape: f32[1,512], index: 2, kind: input, shape index: {}]   ;;  %s3526_s3 = inlined_call_operand.hbm [shape: bf16[512,512], index: 3, kind: input, shape index: {}]   ;;  %s3527_s4 = inlined_call_operand.vmem [shape: f32[1,512], index: 4, kind: input, shape index: {}]   ;;  %s3528_s5 = inlined_call_operand.hbm [shape: bf16[512,512], index: 5, kind: input, shape index: {}]   ;;  %s3529_s6 = inlined_call_operand.vmem [shape: f32[1,512], index: 6, kind: input, shape index: {}]   ;;  %s3530_s7 = inlined_call_operand.hbm [shape: bf16[512,128], index: 7, kind: input, shape index: {}]   ;;  %s3531_s8 = inlined_call_operand.vmem [shape: f32[1,128], index: 8, kind: input, shape index: {}]   ;;  %s3532_s9 = inlined_call_operand.vmem [shape: f32[8,128], index: 9, kind: output, shape index: {}]  }
   0x1   :  { %15 = vsyncpa [#allocation5], 0  ;;  %s3354_s30 = smov [#allocation4]   ;;  %s3355_s11 = smov [#allocation2]  }
   0x2   :  { %s41_s10 = sshll.u32 %s3354_s30, 4  ;;  %s27_s12 = sshll.u32 %s3355_s11, 4  ;;  %s42_s10 = int_to_ptr.vmem [resolvable:$true] %s41_s10  ;;  %s3412_s12 = int_to_ptr.vmem [resolvable:$true] %s27_s12 }
   0x3   :  { %s3284_s15 = scalar_lea.hbm %s3528_s5, 16384 }
   0x4   :  { %p3285_p0 = scmp.ne.s32.totalorder %s3528_s5, %s3284_s15  ;;  %p3288_p1 = scmp.lt.u32.totalorder %s3284_s15, %s3528_s5 }
   0x6   :  { %p3290_p2 = pnand %p3288_p1, %p3285_p0 }
   0x8   :  { %3293 = shalt.err (!%p3290_p2)
}
   0x9   :  { %s3294_s20 = scalar_lea.vmem %s42_s10, 16384  ;;  %p3299_p4 = scmp.lt.s32.totalorder %s42_s10, %s42_s10 }
   0xa   :  { %p3295_p3 = scmp.ne.s32.totalorder %s42_s10, %s3294_s20  ;;  %p3300_p5 = scmp.lt.s32.totalorder %s3294_s20, %s3294_s20 }
   0xc   :  { %p3301_p6 = por %p3300_p5, %p3299_p4 }
   0xe   :  { %p3302_p7 = pnand %p3301_p6, %p3295_p3 }
  0x10   :  { %3305 = shalt.err (!%p3302_p7)
}
  0x11   :  { %s3356_s21 = smov 256   ;;  %s3357_s22 = smov 16  }
  0x12   :  { %47 = dma.hbm_to_vmem [thread:$0]  %s3528_s5, 16384, %s42_s10, [#allocation5], %s3356_s21, %s3356_s21, %s3357_s22  }
  0x13   :  { %s3306_s27 = scalar_lea.hbm %s3526_s3, 16384 }
  0x14   :  { %p3307_p8 = scmp.ne.s32.totalorder %s3526_s3, %s3306_s27  ;;  %p3310_p9 = scmp.lt.u32.totalorder %s3306_s27, %s3526_s3 }
  0x16   :  { %p3312_p10 = pnand %p3310_p9, %p3307_p8 }
  0x18   :  { %3315 = shalt.err (!%p3312_p10)
}
  0x19   :  { %s3316_s13 = scalar_lea.vmem %s3412_s12, 16384  ;;  %p3321_p12 = scmp.lt.s32.totalorder %s3412_s12, %s3412_s12 }
  0x1a   :  { %p3317_p11 = scmp.ne.s32.totalorder %s3412_s12, %s3316_s13  ;;  %p3322_p13 = scmp.lt.s32.totalorder %s3316_s13, %s3316_s13 }
  0x1c   :  { %p3323_p0 = por %p3322_p13, %p3321_p12 }
  0x1e   :  { %p3324_p1 = pnand %p3323_p0, %p3317_p11 }
  0x20   :  { %3327 = shalt.err (!%p3324_p1)
}
  0x21   :  { %33 = dma.hbm_to_vmem [thread:$0]  %s3526_s3, 16384, %s3412_s12, [#allocation3], %s3356_s21, %s3356_s21, %s3357_s22  }
  0x22   :  { %s3358_s14 = smov [#allocation6]   ;;  %s3328_s18 = scalar_lea.hbm %s3530_s7, 4096 }
  0x23   :  { %s55_s15 = sshll.u32 %s3358_s14, 4  ;;  %p3329_p2 = scmp.ne.s32.totalorder %s3530_s7, %s3328_s18  ;;  %s56_s15 = int_to_ptr.vmem [resolvable:$true] %s55_s15 }
  0x24   :  { %p3332_p3 = scmp.lt.u32.totalorder %s3328_s18, %s3530_s7 }
  0x26   :  { %p3334_p4 = pnand %p3332_p3, %p3329_p2 }
  0x28   :  { %3337 = shalt.err (!%p3334_p4)
}
  0x29   :  { %s3338_s25 = scalar_lea.vmem %s56_s15, 4096  ;;  %p3343_p6 = scmp.lt.s32.totalorder %s56_s15, %s56_s15 }
  0x2a   :  { %p3339_p5 = scmp.ne.s32.totalorder %s56_s15, %s3338_s25  ;;  %p3344_p7 = scmp.lt.s32.totalorder %s3338_s25, %s3338_s25 }
  0x2c   :  { %p3345_p8 = por %p3344_p7, %p3343_p6 }
  0x2e   :  { %p3346_p9 = pnand %p3345_p8, %p3339_p5 }
  0x30   :  { %3349 = shalt.err (!%p3346_p9)
}
  0x31   :  { %s3359_s3 = smov 64   ;;  %s3360_s12 = smov 4  }
  0x32   :  { %61 = dma.hbm_to_vmem [thread:$0]  %s3530_s7, 4096, %s56_s15, [#allocation5], %s3359_s3, %s3359_s3, %s3360_s12  }
  0x33   :  { %3350 = dma.done.wait [#allocation3], 16384  }
  0x34   :  { %3351 = vsyncadd [#allocation3], 4294950912 }
  0x35   :  { %3352 = dma.done.wait [#allocation5], 20480  }
  0x36   :  { %3353 = vsyncadd [#allocation5], 4294946816  ;;  %v3361_v0 = vmov 0   ;;  %v76_v1 = vld [vmem:[%s3524_s1] sm:$0xff]  ;;  %vm114_vm0 = vcmask 1043456   ;;  %v77_v3 = vld [vmem:[%s3524_s1 + $0x8] sm:$0xff] }
  0x37   :  { %159 = vmatprep.mubr.bf16.mxu0 %v3361_v0  ;;  %200 = vmatprep.mubr.bf16.mxu1 %v3361_v0  ;;  %v74_v2 = vld [vmem:[%s3523_s0] sm:$0xff]  ;;  %v2492_v4 = vcombine.high %v76_v1, %v76_v1  ;;  %v2491_v5 = vcombine.low %v76_v1, %v76_v1  ;;  %v2494_v6 = vcombine.high %v77_v3, %v77_v3  ;;  %vm110_vm1 = vcmask 64512   ;;  %v2873_v11 = vld [vmem:[#allocation2 + $0xc] ss:$16 sps:$4 sm:$0xff]   ;;  %v2871_v14 = vld [vmem:[#allocation2 + $0x8] ss:$16 sps:$4 sm:$0xff]  }
  0x38   :  { %v2493_v7 = vcombine.low %v77_v3, %v77_v3  ;;  %v2870_v8 = vld [vmem:[#allocation2 + $0x4] ss:$16 sps:$4 sm:$0xff]   ;;  %v75_v10 = vpack.c.bf16 %v74_v2, %v74_v2  ;;  %v2868_v13 = vld [vmem:[#allocation2] ss:$16 sps:$4 sm:$0xff]   ;;  %v2879_v16 = vld [vmem:[#allocation2 + $0x2c] ss:$16 sps:$4 sm:$0xff]  }
  0x39   :  { %2495 = vmatprep.subr.msk.bf16.mxu0 %vm114_vm0, %v2492_v4  ;;  %v116_v9 = vsel %vm114_vm0, %v2491_v5, 0  ;;  %2497 = vmatprep.subr.msk.bf16.mxu1 %vm114_vm0, %v2494_v6  ;;  %v2876_v15 = vld [vmem:[#allocation2 + $0x24] ss:$16 sps:$4 sm:$0xff]   ;;  %v2874_v17 = vld [vmem:[#allocation2 + $0x20] ss:$16 sps:$4 sm:$0xff]  }
  0x3a   :  { %128 = vmatpush1.bf16.msra.mxu0 %v116_v9  ;;  %v122_v12 = vsel %vm114_vm0, %v2493_v7, 0  ;;  %v2877_v18 = vld [vmem:[#allocation2 + $0x28] ss:$16 sps:$4 sm:$0xff]   ;;  %v2882_v19 = vld [vmem:[#allocation2 + $0x44] ss:$16 sps:$4 sm:$0xff]  }
  0x3b   :  { %169 = vmatpush1.bf16.msra.mxu1 %v122_v12  ;;  %1007 = vmatprep.subr.bf16.mxu0 %v2870_v8  ;;  %v2885_v20 = vld [vmem:[#allocation2 + $0x4c] ss:$16 sps:$4 sm:$0xff]   ;;  %v2880_v21 = vld [vmem:[#allocation2 + $0x40] ss:$16 sps:$4 sm:$0xff]   ;;  %v2883_v22 = vld [vmem:[#allocation2 + $0x48] ss:$16 sps:$4 sm:$0xff]  }
  0x3c   :  { %1089 = vmatprep.subr.bf16.mxu1 %v2873_v11  ;;  %v2888_v23 = vld [vmem:[#allocation2 + $0x64] ss:$16 sps:$4 sm:$0xff]   ;;  %v2891_v24 = vld [vmem:[#allocation2 + $0x6c] ss:$16 sps:$4 sm:$0xff]   ;;  %v2886_v25 = vld [vmem:[#allocation2 + $0x60] ss:$16 sps:$4 sm:$0xff]  }
  0x3d   :  { %2496 = vmatmul.mubr.msk.bf16.vlgmr.msra.gmra.mrb[0].mxu0 %vm110_vm1, %v75_v10  ;;  %v2889_v26 = vld [vmem:[#allocation2 + $0x68] ss:$16 sps:$4 sm:$0xff]   ;;  %v2894_v27 = vld [vmem:[#allocation2 + $0x84] ss:$16 sps:$4 sm:$0xff]   ;;  %v2897_v28 = vld [vmem:[#allocation2 + $0x8c] ss:$16 sps:$4 sm:$0xff]  }
  0x3e   :  { %2498 = vmatmul.mubr.msk.bf16.vlgmr.msra.gmra.mrb[0].mxu1 %vm110_vm1, %v75_v10  ;;  %1008 = vmatpush1.bf16.msra.mxu0 %v2868_v13  ;;  %v2892_v29 = vld [vmem:[#allocation2 + $0x80] ss:$16 sps:$4 sm:$0xff]   ;;  %v2895_v30 = vld [vmem:[#allocation2 + $0x88] ss:$16 sps:$4 sm:$0xff]   ;;  %v2900_v31 = vld [vmem:[#allocation2 + $0xa4] ss:$16 sps:$4 sm:$0xff]   ;;  %v80_v13 = vlaneseq }
  0x3f   :  { %1090 = vmatpush1.bf16.msra.mxu1 %v2871_v14  ;;  %1009 = vmatprep.subr.bf16.mxu0 %v2876_v15  ;;  %v2903_v32 = vld [vmem:[#allocation2 + $0xac] ss:$16 sps:$4 sm:$0xff]   ;;  %v2898_v33 = vld [vmem:[#allocation2 + $0xa0] ss:$16 sps:$4 sm:$0xff]   ;;  %v2901_v34 = vld [vmem:[#allocation2 + $0xa8] ss:$16 sps:$4 sm:$0xff]  }
  0x40   :  { %1091 = vmatprep.subr.bf16.mxu1 %v2879_v16  ;;  %v2906_v35 = vld [vmem:[#allocation2 + $0xc4] ss:$16 sps:$4 sm:$0xff]   ;;  %v2909_v36 = vld [vmem:[#allocation2 + $0xcc] ss:$16 sps:$4 sm:$0xff]   ;;  %v2904_v37 = vld [vmem:[#allocation2 + $0xc0] ss:$16 sps:$4 sm:$0xff]  }
  0x41   :  { %v2907_v38 = vld [vmem:[#allocation2 + $0xc8] ss:$16 sps:$4 sm:$0xff]   ;;  %v2912_v39 = vld [vmem:[#allocation2 + $0xe4] ss:$16 sps:$4 sm:$0xff]   ;;  %v2915_v40 = vld [vmem:[#allocation2 + $0xec] ss:$16 sps:$4 sm:$0xff]  }
  0x42   :  { %1010 = vmatpush1.bf16.msra.mxu0 %v2874_v17  ;;  %v2910_v41 = vld [vmem:[#allocation2 + $0xe0] ss:$16 sps:$4 sm:$0xff]   ;;  %v2913_v42 = vld [vmem:[#allocation2 + $0xe8] ss:$16 sps:$4 sm:$0xff]   ;;  %v2918_v43 = vld [vmem:[#allocation2 + $0x104] ss:$16 sps:$4 sm:$0xff]  }
  0x43   :  { %1092 = vmatpush1.bf16.msra.mxu1 %v2877_v18  ;;  %1011 = vmatprep.subr.bf16.mxu0 %v2882_v19  ;;  %v2921_v44 = vld [vmem:[#allocation2 + $0x10c] ss:$16 sps:$4 sm:$0xff]   ;;  %v2916_v45 = vld [vmem:[#allocation2 + $0x100] ss:$16 sps:$4 sm:$0xff]   ;;  %v2919_v46 = vld [vmem:[#allocation2 + $0x108] ss:$16 sps:$4 sm:$0xff]  }
  0x44   :  { %1093 = vmatprep.subr.bf16.mxu1 %v2885_v20  ;;  %v2924_v47 = vld [vmem:[#allocation2 + $0x124] ss:$16 sps:$4 sm:$0xff]   ;;  %v2922_v48 = vld [vmem:[#allocation2 + $0x120] ss:$16 sps:$4 sm:$0xff]   ;;  %v2927_v49 = vld [vmem:[#allocation2 + $0x12c] ss:$16 sps:$4 sm:$0xff]  }
  0x45   :  { %v2925_v50 = vld [vmem:[#allocation2 + $0x128] ss:$16 sps:$4 sm:$0xff]   ;;  %v2930_v51 = vld [vmem:[#allocation2 + $0x144] ss:$16 sps:$4 sm:$0xff]   ;;  %v2933_v52 = vld [vmem:[#allocation2 + $0x14c] ss:$16 sps:$4 sm:$0xff]  }
  0x46   :  { %1012 = vmatpush1.bf16.msra.mxu0 %v2880_v21  ;;  %v2928_v53 = vld [vmem:[#allocation2 + $0x140] ss:$16 sps:$4 sm:$0xff]   ;;  %v2931_v54 = vld [vmem:[#allocation2 + $0x148] ss:$16 sps:$4 sm:$0xff]   ;;  %v2936_v55 = vld [vmem:[#allocation2 + $0x164] ss:$16 sps:$4 sm:$0xff]  }
  0x47   :  { %1094 = vmatpush1.bf16.msra.mxu1 %v2883_v22  ;;  %1013 = vmatprep.subr.bf16.mxu0 %v2888_v23  ;;  %v2939_v56 = vld [vmem:[#allocation2 + $0x16c] ss:$16 sps:$4 sm:$0xff]   ;;  %v2934_v57 = vld [vmem:[#allocation2 + $0x160] ss:$16 sps:$4 sm:$0xff]   ;;  %v2937_v58 = vld [vmem:[#allocation2 + $0x168] ss:$16 sps:$4 sm:$0xff]  }
  0x48   :  { %1095 = vmatprep.subr.bf16.mxu1 %v2891_v24  ;;  %v2942_v59 = vld [vmem:[#allocation2 + $0x184] ss:$16 sps:$4 sm:$0xff]   ;;  %v2945_v60 = vld [vmem:[#allocation2 + $0x18c] ss:$16 sps:$4 sm:$0xff]   ;;  %v2940_v61 = vld [vmem:[#allocation2 + $0x180] ss:$16 sps:$4 sm:$0xff]  }
  0x49   :  { %v2943_v62 = vld [vmem:[#allocation2 + $0x188] ss:$16 sps:$4 sm:$0xff]   ;;  %v2948_v63 = vld [vmem:[#allocation2 + $0x1a4] ss:$16 sps:$4 sm:$0xff]   ;;  %v2951_v0 = vld [vmem:[#allocation2 + $0x1ac] ss:$16 sps:$4 sm:$0xff]  }
  0x4a   :  { %1014 = vmatpush1.bf16.msra.mxu0 %v2886_v25  ;;  %v2946_v1 = vld [vmem:[#allocation2 + $0x1a0] ss:$16 sps:$4 sm:$0xff]   ;;  %v2949_v2 = vld [vmem:[#allocation2 + $0x1a8] ss:$16 sps:$4 sm:$0xff]   ;;  %v2954_v3 = vld [vmem:[#allocation2 + $0x1c4] ss:$16 sps:$4 sm:$0xff]  }
  0x4b   :  { %1096 = vmatpush1.bf16.msra.mxu1 %v2889_v26  ;;  %1015 = vmatprep.subr.bf16.mxu0 %v2894_v27  ;;  %v2957_v4 = vld [vmem:[#allocation2 + $0x1cc] ss:$16 sps:$4 sm:$0xff]   ;;  %v2952_v5 = vld [vmem:[#allocation2 + $0x1c0] ss:$16 sps:$4 sm:$0xff]   ;;  %v2955_v6 = vld [vmem:[#allocation2 + $0x1c8] ss:$16 sps:$4 sm:$0xff]  }
  0x4c   :  { %1097 = vmatprep.subr.bf16.mxu1 %v2897_v28  ;;  %v2960_v7 = vld [vmem:[#allocation2 + $0x1e4] ss:$16 sps:$4 sm:$0xff]   ;;  %v2963_v8 = vld [vmem:[#allocation2 + $0x1ec] ss:$16 sps:$4 sm:$0xff]   ;;  %v2958_v9 = vld [vmem:[#allocation2 + $0x1e0] ss:$16 sps:$4 sm:$0xff]  }
  0x4d   :  { %v2961_v10 = vld [vmem:[#allocation2 + $0x1e8] ss:$16 sps:$4 sm:$0xff]   ;;  %v2966_v11 = vld [vmem:[#allocation2 + $0x204] ss:$16 sps:$4 sm:$0xff]   ;;  %v2969_v12 = vld [vmem:[#allocation2 + $0x20c] ss:$16 sps:$4 sm:$0xff]  }
  0x4e   :  { %1016 = vmatpush1.bf16.msra.mxu0 %v2892_v29  ;;  %v3464_v14 = vshrl.u32 %v80_v13, 7  ;;  %v3472_v16 = vld [vmem:[%s3525_s2] sm:$0xf]  ;;  %v3026_v13 = vld [vmem:[#allocation2 + $0x344] ss:$16 sps:$4 sm:$0xff]  }
  0x4f   :  { %1098 = vmatpush1.bf16.msra.mxu1 %v2895_v30  ;;  %1017 = vmatprep.subr.bf16.mxu0 %v2900_v31 }
  0x50   :  { %1099 = vmatprep.subr.bf16.mxu1 %v2903_v32  ;;  %v3467_v15 = vsub.s32 0, %v3464_v14  ;;  %v3475_v17 = vsub.s32 1, %v3464_v14  ;;  %v3478_v18 = vsub.s32 3, %v3464_v14 }
  0x52   :  { %1018 = vmatpush1.bf16.msra.mxu0 %v2898_v33  ;;  %v83_v19 = vrot.slane %v3472_v16, %v3467_v15  ;;  %v87_v20 = vrot.slane %v3472_v16, %v3475_v17  ;;  %v95_v21 = vrot.slane %v3472_v16, %v3478_v18 }
  0x53   :  { %1100 = vmatpush1.bf16.msra.mxu1 %v2901_v34  ;;  %1019 = vmatprep.subr.bf16.mxu0 %v2906_v35 }
  0x54   :  { %1101 = vmatprep.subr.bf16.mxu1 %v2909_v36 }
  0x56   :  { %1020 = vmatpush1.bf16.msra.mxu0 %v2904_v37  ;;  %v2964_v37 = vld [vmem:[#allocation2 + $0x200] ss:$16 sps:$4 sm:$0xff]  }
  0x57   :  { %1102 = vmatpush1.bf16.msra.mxu1 %v2907_v38  ;;  %1021 = vmatprep.subr.bf16.mxu0 %v2912_v39  ;;  %v2967_v38 = vld [vmem:[#allocation2 + $0x208] ss:$16 sps:$4 sm:$0xff]  }
  0x58   :  { %1103 = vmatprep.subr.bf16.mxu1 %v2915_v40  ;;  %v2972_v40 = vld [vmem:[#allocation2 + $0x224] ss:$16 sps:$4 sm:$0xff]  }
  0x5a   :  { %1022 = vmatpush1.bf16.msra.mxu0 %v2910_v41  ;;  %v2975_v41 = vld [vmem:[#allocation2 + $0x22c] ss:$16 sps:$4 sm:$0xff]  }
  0x5b   :  { %1104 = vmatpush1.bf16.msra.mxu1 %v2913_v42  ;;  %1023 = vmatprep.subr.bf16.mxu0 %v2918_v43  ;;  %v2970_v43 = vld [vmem:[#allocation2 + $0x220] ss:$16 sps:$4 sm:$0xff]  }
  0x5c   :  { %1105 = vmatprep.subr.bf16.mxu1 %v2921_v44  ;;  %v2973_v44 = vld [vmem:[#allocation2 + $0x228] ss:$16 sps:$4 sm:$0xff]  }
  0x5e   :  { %1024 = vmatpush1.bf16.msra.mxu0 %v2916_v45  ;;  %v2978_v45 = vld [vmem:[#allocation2 + $0x244] ss:$16 sps:$4 sm:$0xff]  }
  0x5f   :  { %1106 = vmatpush1.bf16.msra.mxu1 %v2919_v46  ;;  %1025 = vmatprep.subr.bf16.mxu0 %v2924_v47  ;;  %v2981_v46 = vld [vmem:[#allocation2 + $0x24c] ss:$16 sps:$4 sm:$0xff]   ;;  %v2976_v47 = vld [vmem:[#allocation2 + $0x240] ss:$16 sps:$4 sm:$0xff]  }
  0x60   :  { %1107 = vmatprep.subr.bf16.mxu1 %v2927_v49  ;;  %v2984_v49 = vld [vmem:[#allocation2 + $0x264] ss:$16 sps:$4 sm:$0xff]  }
  0x62   :  { %1026 = vmatpush1.bf16.msra.mxu0 %v2922_v48  ;;  %v2979_v48 = vld [vmem:[#allocation2 + $0x248] ss:$16 sps:$4 sm:$0xff]  }
  0x63   :  { %1108 = vmatpush1.bf16.msra.mxu1 %v2925_v50  ;;  %1027 = vmatprep.subr.bf16.mxu0 %v2930_v51  ;;  %v2987_v50 = vld [vmem:[#allocation2 + $0x26c] ss:$16 sps:$4 sm:$0xff]   ;;  %v2982_v51 = vld [vmem:[#allocation2 + $0x260] ss:$16 sps:$4 sm:$0xff]  }
  0x64   :  { %1109 = vmatprep.subr.bf16.mxu1 %v2933_v52  ;;  %v2985_v52 = vld [vmem:[#allocation2 + $0x268] ss:$16 sps:$4 sm:$0xff]  }
  0x66   :  { %1028 = vmatpush1.bf16.msra.mxu0 %v2928_v53  ;;  %v2990_v53 = vld [vmem:[#allocation2 + $0x284] ss:$16 sps:$4 sm:$0xff]  }
  0x67   :  { %1110 = vmatpush1.bf16.msra.mxu1 %v2931_v54  ;;  %1029 = vmatprep.subr.bf16.mxu0 %v2936_v55  ;;  %v2993_v54 = vld [vmem:[#allocation2 + $0x28c] ss:$16 sps:$4 sm:$0xff]   ;;  %v2988_v55 = vld [vmem:[#allocation2 + $0x280] ss:$16 sps:$4 sm:$0xff]  }
  0x68   :  { %1111 = vmatprep.subr.bf16.mxu1 %v2939_v56  ;;  %v2991_v56 = vld [vmem:[#allocation2 + $0x288] ss:$16 sps:$4 sm:$0xff]  }
  0x6a   :  { %1030 = vmatpush1.bf16.msra.mxu0 %v2934_v57  ;;  %v2996_v57 = vld [vmem:[#allocation2 + $0x2a4] ss:$16 sps:$4 sm:$0xff]  }
  0x6b   :  { %1112 = vmatpush1.bf16.msra.mxu1 %v2937_v58  ;;  %1031 = vmatprep.subr.bf16.mxu0 %v2942_v59  ;;  %v2999_v58 = vld [vmem:[#allocation2 + $0x2ac] ss:$16 sps:$4 sm:$0xff]   ;;  %v2994_v59 = vld [vmem:[#allocation2 + $0x2a0] ss:$16 sps:$4 sm:$0xff]  }
  0x6c   :  { %1113 = vmatprep.subr.bf16.mxu1 %v2945_v60  ;;  %v2997_v60 = vld [vmem:[#allocation2 + $0x2a8] ss:$16 sps:$4 sm:$0xff]  }
  0x6e   :  { %1032 = vmatpush1.bf16.msra.mxu0 %v2940_v61  ;;  %v3002_v61 = vld [vmem:[#allocation2 + $0x2c4] ss:$16 sps:$4 sm:$0xff]  }
  0x6f   :  { %1114 = vmatpush1.bf16.msra.mxu1 %v2943_v62  ;;  %1033 = vmatprep.subr.bf16.mxu0 %v2948_v63  ;;  %v3005_v62 = vld [vmem:[#allocation2 + $0x2cc] ss:$16 sps:$4 sm:$0xff]   ;;  %v3000_v63 = vld [vmem:[#allocation2 + $0x2c0] ss:$16 sps:$4 sm:$0xff]  }
  0x70   :  { %1115 = vmatprep.subr.bf16.mxu1 %v2951_v0  ;;  %v3003_v0 = vld [vmem:[#allocation2 + $0x2c8] ss:$16 sps:$4 sm:$0xff]  }
  0x72   :  { %1034 = vmatpush1.bf16.msra.mxu0 %v2946_v1  ;;  %v3008_v1 = vld [vmem:[#allocation2 + $0x2e4] ss:$16 sps:$4 sm:$0xff]  }
  0x73   :  { %1116 = vmatpush1.bf16.msra.mxu1 %v2949_v2  ;;  %1035 = vmatprep.subr.bf16.mxu0 %v2954_v3  ;;  %v3011_v2 = vld [vmem:[#allocation2 + $0x2ec] ss:$16 sps:$4 sm:$0xff]   ;;  %v3006_v3 = vld [vmem:[#allocation2 + $0x2e0] ss:$16 sps:$4 sm:$0xff]  }
  0x74   :  { %1117 = vmatprep.subr.bf16.mxu1 %v2957_v4  ;;  %v3009_v4 = vld [vmem:[#allocation2 + $0x2e8] ss:$16 sps:$4 sm:$0xff]  }
  0x76   :  { %1036 = vmatpush1.bf16.msra.mxu0 %v2952_v5  ;;  %v3014_v5 = vld [vmem:[#allocation2 + $0x304] ss:$16 sps:$4 sm:$0xff]  }
  0x77   :  { %1118 = vmatpush1.bf16.msra.mxu1 %v2955_v6  ;;  %1037 = vmatprep.subr.bf16.mxu0 %v2960_v7  ;;  %v3017_v6 = vld [vmem:[#allocation2 + $0x30c] ss:$16 sps:$4 sm:$0xff]   ;;  %v3012_v7 = vld [vmem:[#allocation2 + $0x300] ss:$16 sps:$4 sm:$0xff]  }
  0x78   :  { %1119 = vmatprep.subr.bf16.mxu1 %v2963_v8  ;;  %v3015_v8 = vld [vmem:[#allocation2 + $0x308] ss:$16 sps:$4 sm:$0xff]  }
  0x7a   :  { %1038 = vmatpush1.bf16.msra.mxu0 %v2958_v9  ;;  %v3020_v9 = vld [vmem:[#allocation2 + $0x324] ss:$16 sps:$4 sm:$0xff]  }
  0x7b   :  { %1120 = vmatpush1.bf16.msra.mxu1 %v2961_v10  ;;  %1048 = vmatprep.subr.bf16.mxu0 %v2966_v11  ;;  %v3023_v10 = vld [vmem:[#allocation2 + $0x32c] ss:$16 sps:$4 sm:$0xff]   ;;  %v3018_v11 = vld [vmem:[#allocation2 + $0x320] ss:$16 sps:$4 sm:$0xff]  }
  0x7c   :  { %1130 = vmatprep.subr.bf16.mxu1 %v2969_v12  ;;  %v3021_v12 = vld [vmem:[#allocation2 + $0x328] ss:$16 sps:$4 sm:$0xff]  }
 0x110   :  { %v161_v22 = vpop.f32.mrb[0].mxu0 }
 0x111   :  { %v162_v23 = vadd.f32 %v161_v22, %v83_v19  ;;  %v163_v24 = vpop.f32.mrb[1].mxu0  ;;  %v3486_v25 = vpop.f32.mrb[0].mxu1  ;;  %v3029_v19 = vld [vmem:[#allocation2 + $0x34c] ss:$16 sps:$4 sm:$0xff]   ;;  %v3032_v22 = vld [vmem:[#allocation2 + $0x364] ss:$16 sps:$4 sm:$0xff]  }
 0x112   :  { %v164_v26 = vadd.f32 %v163_v24, %v87_v20  ;;  %v165_v27 = vpop.f32.mrb[2].mxu0  ;;  %v204_v28 = vpop.f32.mrb[1].mxu1  ;;  %v3024_v20 = vld [vmem:[#allocation2 + $0x340] ss:$16 sps:$4 sm:$0xff]  }
 0x113   :  { %v209_v29 = vmax.f32 %v162_v23, 0.0  ;;  %v166_v30 = vpop.f32.mrb[3].mxu0  ;;  %v205_v31 = vadd.f32 %v204_v28, %v95_v21  ;;  %v206_v32 = vpop.f32.mrb[2].mxu1  ;;  %v3027_v21 = vld [vmem:[#allocation2 + $0x348] ss:$16 sps:$4 sm:$0xff]  }
 0x114   :  { %v210_v33 = vmax.f32 %v164_v26, 0.0  ;;  %v207_v34 = vpop.f32.mrb[3].mxu1  ;;  %v3035_v23 = vld [vmem:[#allocation2 + $0x36c] ss:$16 sps:$4 sm:$0xff]   ;;  %v3030_v24 = vld [vmem:[#allocation2 + $0x360] ss:$16 sps:$4 sm:$0xff]  }
 0x115   :  { %v212_v35 = vmax.f32 %v205_v31, 0.0  ;;  %v213_v39 = vpack.c.bf16 %v209_v29, %v209_v29  ;;  %v3033_v26 = vld [vmem:[#allocation2 + $0x368] ss:$16 sps:$4 sm:$0xff]   ;;  %v3038_v27 = vld [vmem:[#allocation2 + $0x384] ss:$16 sps:$4 sm:$0xff]   ;;  %v3489_v31 = vsub.s32 2, %v3464_v14 }
 0x116   :  { %v214_v36 = vpack.c.bf16 %v210_v33, %v210_v33  ;;  %v3041_v28 = vld [vmem:[#allocation2 + $0x38c] ss:$16 sps:$4 sm:$0xff]   ;;  %v3036_v29 = vld [vmem:[#allocation2 + $0x380] ss:$16 sps:$4 sm:$0xff]   ;;  %v3039_v30 = vld [vmem:[#allocation2 + $0x388] ss:$16 sps:$4 sm:$0xff]  }
 0x117   :  { %v216_v42 = vpack.c.bf16 %v212_v35, %v212_v35  ;;  %v3044_v32 = vld [vmem:[#allocation2 + $0x3a4] ss:$16 sps:$4 sm:$0xff]   ;;  %v3047_v33 = vld [vmem:[#allocation2 + $0x3ac] ss:$16 sps:$4 sm:$0xff]   ;;  %v3042_v34 = vld [vmem:[#allocation2 + $0x3a0] ss:$16 sps:$4 sm:$0xff]  }
 0x118   :  { %1039 = vmatprep.mubr.bf16.mxu0 %v214_v36  ;;  %1121 = vmatprep.mubr.bf16.mxu1 %v214_v36  ;;  %v3045_v35 = vld [vmem:[#allocation2 + $0x3a8] ss:$16 sps:$4 sm:$0xff]   ;;  %v91_v36 = vrot.slane %v3472_v16, %v3489_v31  ;;  %v3062_v16 = vld [vmem:[#allocation4 + $0x4] ss:$16 sps:$4 sm:$0xff]  }
 0x119   :  { %1040 = vmatmul.mubr.bf16.vlgmr.msra.gmra.mrb[4].mxu0 %v213_v39  ;;  %1122 = vmatmul.mubr.bf16.vlgmr.msra.gmra.mrb[4].mxu1 %v213_v39  ;;  %v3048_v39 = vld [vmem:[#allocation2 + $0x3c0] ss:$16 sps:$4 sm:$0xff]  }
 0x11a   :  { %1049 = vmatpush1.bf16.msra.mxu0 %v2964_v37  ;;  %1131 = vmatpush1.bf16.msra.mxu1 %v2967_v38  ;;  %v3050_v37 = vld [vmem:[#allocation2 + $0x3c4] ss:$16 sps:$4 sm:$0xff]   ;;  %v3053_v38 = vld [vmem:[#allocation2 + $0x3cc] ss:$16 sps:$4 sm:$0xff]   ;;  %v203_v14 = vadd.f32 %v3486_v25, %v91_v36 }
 0x11b   :  { %1050 = vmatprep.subr.bf16.mxu0 %v2972_v40  ;;  %1132 = vmatprep.subr.bf16.mxu1 %v2975_v41  ;;  %v3051_v40 = vld [vmem:[#allocation2 + $0x3c8] ss:$16 sps:$4 sm:$0xff]   ;;  %v3056_v41 = vld [vmem:[#allocation2 + $0x3e4] ss:$16 sps:$4 sm:$0xff]  }
 0x11c   :  { %1080 = vmatprep.mubr.bf16.mxu0 %v216_v42  ;;  %1162 = vmatprep.mubr.bf16.mxu1 %v216_v42  ;;  %v3059_v42 = vld [vmem:[#allocation2 + $0x3ec] ss:$16 sps:$4 sm:$0xff]   ;;  %v3068_v25 = vld [vmem:[#allocation4 + $0x24] ss:$16 sps:$4 sm:$0xff]  }
 0x11d   :  { %v3134_v36 = vld [vmem:[#allocation4 + $0x184] ss:$16 sps:$4 sm:$0xff]  }
 0x11e   :  { %1051 = vmatpush1.bf16.msra.mxu0 %v2970_v43  ;;  %1133 = vmatpush1.bf16.msra.mxu1 %v2973_v44  ;;  %v3054_v43 = vld [vmem:[#allocation2 + $0x3e0] ss:$16 sps:$4 sm:$0xff]   ;;  %v3057_v44 = vld [vmem:[#allocation2 + $0x3e8] ss:$16 sps:$4 sm:$0xff]  }
 0x11f   :  { %1052 = vmatprep.subr.bf16.mxu0 %v2978_v45  ;;  %1134 = vmatprep.subr.bf16.mxu1 %v2981_v46  ;;  %v211_v45 = vmax.f32 %v203_v14, 0.0  ;;  %v3065_v46 = vld [vmem:[#allocation4 + $0xc] ss:$16 sps:$4 sm:$0xff]  }
 0x120   :  { %v3143_v14 = vld [vmem:[#allocation4 + $0x1ac] ss:$16 sps:$4 sm:$0xff]  }
 0x122   :  { %1053 = vmatpush1.bf16.msra.mxu0 %v2976_v47  ;;  %1135 = vmatpush1.bf16.msra.mxu1 %v2979_v48  ;;  %v3060_v47 = vld [vmem:[#allocation4] ss:$16 sps:$4 sm:$0xff]   ;;  %v3063_v48 = vld [vmem:[#allocation4 + $0x8] ss:$16 sps:$4 sm:$0xff]  }
 0x123   :  { %1054 = vmatprep.subr.bf16.mxu0 %v2984_v49  ;;  %1136 = vmatprep.subr.bf16.mxu1 %v2987_v50  ;;  %v215_v49 = vpack.c.bf16 %v211_v45, %v211_v45  ;;  %v3071_v50 = vld [vmem:[#allocation4 + $0x2c] ss:$16 sps:$4 sm:$0xff]   ;;  %v3144_v45 = vld [vmem:[#allocation4 + $0x1c0] ss:$16 sps:$4 sm:$0xff]  }
 0x126   :  { %1055 = vmatpush1.bf16.msra.mxu0 %v2982_v51  ;;  %1137 = vmatpush1.bf16.msra.mxu1 %v2985_v52  ;;  %v3066_v51 = vld [vmem:[#allocation4 + $0x20] ss:$16 sps:$4 sm:$0xff]   ;;  %v3069_v52 = vld [vmem:[#allocation4 + $0x28] ss:$16 sps:$4 sm:$0xff]  }
 0x127   :  { %1056 = vmatprep.subr.bf16.mxu0 %v2990_v53  ;;  %1138 = vmatprep.subr.bf16.mxu1 %v2993_v54  ;;  %v3074_v53 = vld [vmem:[#allocation4 + $0x44] ss:$16 sps:$4 sm:$0xff]   ;;  %v3077_v54 = vld [vmem:[#allocation4 + $0x4c] ss:$16 sps:$4 sm:$0xff]  }
 0x12a   :  { %1057 = vmatpush1.bf16.msra.mxu0 %v2988_v55  ;;  %1139 = vmatpush1.bf16.msra.mxu1 %v2991_v56  ;;  %v3072_v55 = vld [vmem:[#allocation4 + $0x40] ss:$16 sps:$4 sm:$0xff]   ;;  %v3075_v56 = vld [vmem:[#allocation4 + $0x48] ss:$16 sps:$4 sm:$0xff]  }
 0x12b   :  { %1058 = vmatprep.subr.bf16.mxu0 %v2996_v57  ;;  %1140 = vmatprep.subr.bf16.mxu1 %v2999_v58  ;;  %v3080_v57 = vld [vmem:[#allocation4 + $0x64] ss:$16 sps:$4 sm:$0xff]   ;;  %v3083_v58 = vld [vmem:[#allocation4 + $0x6c] ss:$16 sps:$4 sm:$0xff]  }
 0x12e   :  { %1059 = vmatpush1.bf16.msra.mxu0 %v2994_v59  ;;  %1141 = vmatpush1.bf16.msra.mxu1 %v2997_v60  ;;  %v3078_v59 = vld [vmem:[#allocation4 + $0x60] ss:$16 sps:$4 sm:$0xff]   ;;  %v3081_v60 = vld [vmem:[#allocation4 + $0x68] ss:$16 sps:$4 sm:$0xff]  }
 0x12f   :  { %1060 = vmatprep.subr.bf16.mxu0 %v3002_v61  ;;  %1142 = vmatprep.subr.bf16.mxu1 %v3005_v62  ;;  %v3086_v61 = vld [vmem:[#allocation4 + $0x84] ss:$16 sps:$4 sm:$0xff]   ;;  %v3089_v62 = vld [vmem:[#allocation4 + $0x8c] ss:$16 sps:$4 sm:$0xff]  }
 0x132   :  { %1061 = vmatpush1.bf16.msra.mxu0 %v3000_v63  ;;  %1143 = vmatpush1.bf16.msra.mxu1 %v3003_v0  ;;  %v3084_v63 = vld [vmem:[#allocation4 + $0x80] ss:$16 sps:$4 sm:$0xff]   ;;  %v3087_v0 = vld [vmem:[#allocation4 + $0x88] ss:$16 sps:$4 sm:$0xff]  }
 0x133   :  { %1062 = vmatprep.subr.bf16.mxu0 %v3008_v1  ;;  %1144 = vmatprep.subr.bf16.mxu1 %v3011_v2  ;;  %v3092_v1 = vld [vmem:[#allocation4 + $0xa4] ss:$16 sps:$4 sm:$0xff]   ;;  %v3095_v2 = vld [vmem:[#allocation4 + $0xac] ss:$16 sps:$4 sm:$0xff]  }
 0x136   :  { %1063 = vmatpush1.bf16.msra.mxu0 %v3006_v3  ;;  %1145 = vmatpush1.bf16.msra.mxu1 %v3009_v4  ;;  %v3090_v3 = vld [vmem:[#allocation4 + $0xa0] ss:$16 sps:$4 sm:$0xff]   ;;  %v3093_v4 = vld [vmem:[#allocation4 + $0xa8] ss:$16 sps:$4 sm:$0xff]  }
 0x137   :  { %1064 = vmatprep.subr.bf16.mxu0 %v3014_v5  ;;  %1146 = vmatprep.subr.bf16.mxu1 %v3017_v6  ;;  %v3098_v5 = vld [vmem:[#allocation4 + $0xc4] ss:$16 sps:$4 sm:$0xff]   ;;  %v3101_v6 = vld [vmem:[#allocation4 + $0xcc] ss:$16 sps:$4 sm:$0xff]  }
 0x13a   :  { %1065 = vmatpush1.bf16.msra.mxu0 %v3012_v7  ;;  %1147 = vmatpush1.bf16.msra.mxu1 %v3015_v8  ;;  %v3096_v7 = vld [vmem:[#allocation4 + $0xc0] ss:$16 sps:$4 sm:$0xff]   ;;  %v3099_v8 = vld [vmem:[#allocation4 + $0xc8] ss:$16 sps:$4 sm:$0xff]  }
 0x13b   :  { %1066 = vmatprep.subr.bf16.mxu0 %v3020_v9  ;;  %1148 = vmatprep.subr.bf16.mxu1 %v3023_v10  ;;  %v3104_v9 = vld [vmem:[#allocation4 + $0xe4] ss:$16 sps:$4 sm:$0xff]   ;;  %v3107_v10 = vld [vmem:[#allocation4 + $0xec] ss:$16 sps:$4 sm:$0xff]  }
 0x13e   :  { %1067 = vmatpush1.bf16.msra.mxu0 %v3018_v11  ;;  %1149 = vmatpush1.bf16.msra.mxu1 %v3021_v12  ;;  %v3102_v11 = vld [vmem:[#allocation4 + $0xe0] ss:$16 sps:$4 sm:$0xff]   ;;  %v3105_v12 = vld [vmem:[#allocation4 + $0xe8] ss:$16 sps:$4 sm:$0xff]  }
 0x13f   :  { %1068 = vmatprep.subr.bf16.mxu0 %v3026_v13  ;;  %1150 = vmatprep.subr.bf16.mxu1 %v3029_v19  ;;  %v3110_v13 = vld [vmem:[#allocation4 + $0x104] ss:$16 sps:$4 sm:$0xff]   ;;  %v3113_v19 = vld [vmem:[#allocation4 + $0x10c] ss:$16 sps:$4 sm:$0xff]  }
 0x142   :  { %1069 = vmatpush1.bf16.msra.mxu0 %v3024_v20  ;;  %1151 = vmatpush1.bf16.msra.mxu1 %v3027_v21  ;;  %v3108_v20 = vld [vmem:[#allocation4 + $0x100] ss:$16 sps:$4 sm:$0xff]   ;;  %v3111_v21 = vld [vmem:[#allocation4 + $0x108] ss:$16 sps:$4 sm:$0xff]  }
 0x143   :  { %1070 = vmatprep.subr.bf16.mxu0 %v3032_v22  ;;  %1152 = vmatprep.subr.bf16.mxu1 %v3035_v23  ;;  %v3116_v22 = vld [vmem:[#allocation4 + $0x124] ss:$16 sps:$4 sm:$0xff]   ;;  %v3119_v23 = vld [vmem:[#allocation4 + $0x12c] ss:$16 sps:$4 sm:$0xff]  }
 0x146   :  { %1071 = vmatpush1.bf16.msra.mxu0 %v3030_v24  ;;  %1153 = vmatpush1.bf16.msra.mxu1 %v3033_v26  ;;  %v3114_v24 = vld [vmem:[#allocation4 + $0x120] ss:$16 sps:$4 sm:$0xff]   ;;  %v3117_v26 = vld [vmem:[#allocation4 + $0x128] ss:$16 sps:$4 sm:$0xff]  }
 0x147   :  { %1072 = vmatprep.subr.bf16.mxu0 %v3038_v27  ;;  %1154 = vmatprep.subr.bf16.mxu1 %v3041_v28  ;;  %v3122_v27 = vld [vmem:[#allocation4 + $0x144] ss:$16 sps:$4 sm:$0xff]   ;;  %v3125_v28 = vld [vmem:[#allocation4 + $0x14c] ss:$16 sps:$4 sm:$0xff]  }
 0x14a   :  { %1073 = vmatpush1.bf16.msra.mxu0 %v3036_v29  ;;  %1155 = vmatpush1.bf16.msra.mxu1 %v3039_v30  ;;  %v3120_v29 = vld [vmem:[#allocation4 + $0x140] ss:$16 sps:$4 sm:$0xff]   ;;  %v3123_v30 = vld [vmem:[#allocation4 + $0x148] ss:$16 sps:$4 sm:$0xff]  }
 0x14b   :  { %1074 = vmatprep.subr.bf16.mxu0 %v3044_v32  ;;  %1156 = vmatprep.subr.bf16.mxu1 %v3047_v33  ;;  %v3128_v32 = vld [vmem:[#allocation4 + $0x164] ss:$16 sps:$4 sm:$0xff]   ;;  %v3131_v33 = vld [vmem:[#allocation4 + $0x16c] ss:$16 sps:$4 sm:$0xff]  }
 0x14e   :  { %1075 = vmatpush1.bf16.msra.mxu0 %v3042_v34  ;;  %1157 = vmatpush1.bf16.msra.mxu1 %v3045_v35  ;;  %v3126_v34 = vld [vmem:[#allocation4 + $0x160] ss:$16 sps:$4 sm:$0xff]   ;;  %v3129_v35 = vld [vmem:[#allocation4 + $0x168] ss:$16 sps:$4 sm:$0xff]  }
 0x14f   :  { %1076 = vmatprep.subr.bf16.mxu0 %v3050_v37  ;;  %1158 = vmatprep.subr.bf16.mxu1 %v3053_v38  ;;  %v3137_v37 = vld [vmem:[#allocation4 + $0x18c] ss:$16 sps:$4 sm:$0xff]   ;;  %v3132_v38 = vld [vmem:[#allocation4 + $0x180] ss:$16 sps:$4 sm:$0xff]  }
 0x152   :  { %1077 = vmatpush1.bf16.msra.mxu0 %v3048_v39  ;;  %1159 = vmatpush1.bf16.msra.mxu1 %v3051_v40  ;;  %v3135_v39 = vld [vmem:[#allocation4 + $0x188] ss:$16 sps:$4 sm:$0xff]   ;;  %v3140_v40 = vld [vmem:[#allocation4 + $0x1a4] ss:$16 sps:$4 sm:$0xff]  }
 0x153   :  { %1078 = vmatprep.subr.bf16.mxu0 %v3056_v41  ;;  %1160 = vmatprep.subr.bf16.mxu1 %v3059_v42  ;;  %v3138_v41 = vld [vmem:[#allocation4 + $0x1a0] ss:$16 sps:$4 sm:$0xff]   ;;  %v3141_v42 = vld [vmem:[#allocation4 + $0x1a8] ss:$16 sps:$4 sm:$0xff]  }
 0x156   :  { %1079 = vmatpush1.bf16.msra.mxu0 %v3054_v43  ;;  %1161 = vmatpush1.bf16.msra.mxu1 %v3057_v44  ;;  %v3146_v43 = vld [vmem:[#allocation4 + $0x1c4] ss:$16 sps:$4 sm:$0xff]   ;;  %v3149_v44 = vld [vmem:[#allocation4 + $0x1cc] ss:$16 sps:$4 sm:$0xff]  }
 0x157   :  { %1969 = vmatprep.subr.bf16.mxu0 %v3062_v16  ;;  %2051 = vmatprep.subr.bf16.mxu1 %v3065_v46  ;;  %v3147_v16 = vld [vmem:[#allocation4 + $0x1c8] ss:$16 sps:$4 sm:$0xff]   ;;  %v3152_v46 = vld [vmem:[#allocation4 + $0x1e4] ss:$16 sps:$4 sm:$0xff]  }
 0x159   :  { %1081 = vmatmul.mubr.bf16.vlgmr.msra.gmra.mrb[4].mxu0 %v215_v49  ;;  %1163 = vmatmul.mubr.bf16.vlgmr.msra.gmra.mrb[4].mxu1 %v215_v49  ;;  %v3153_v49 = vld [vmem:[#allocation4 + $0x1e8] ss:$16 sps:$4 sm:$0xff]  }
 0x15a   :  { %1970 = vmatpush1.bf16.msra.mxu0 %v3060_v47  ;;  %2052 = vmatpush1.bf16.msra.mxu1 %v3063_v48  ;;  %v3155_v47 = vld [vmem:[#allocation4 + $0x1ec] ss:$16 sps:$4 sm:$0xff]   ;;  %v3150_v48 = vld [vmem:[#allocation4 + $0x1e0] ss:$16 sps:$4 sm:$0xff]  }
 0x15b   :  { %1971 = vmatprep.subr.bf16.mxu0 %v3068_v25  ;;  %2053 = vmatprep.subr.bf16.mxu1 %v3071_v50  ;;  %v3158_v25 = vld [vmem:[#allocation4 + $0x204] ss:$16 sps:$4 sm:$0xff]   ;;  %v3161_v50 = vld [vmem:[#allocation4 + $0x20c] ss:$16 sps:$4 sm:$0xff]  }
 0x15e   :  { %1972 = vmatpush1.bf16.msra.mxu0 %v3066_v51  ;;  %2054 = vmatpush1.bf16.msra.mxu1 %v3069_v52  ;;  %v3497_v51 = vld [vmem:[%s3527_s4] sm:$0xf] }
 0x15f   :  { %1973 = vmatprep.subr.bf16.mxu0 %v3074_v53  ;;  %2055 = vmatprep.subr.bf16.mxu1 %v3077_v54  ;;  %v350_v52 = vrot.slane %v3497_v51, %v3467_v15  ;;  %v354_v53 = vrot.slane %v3497_v51, %v3475_v17  ;;  %v362_v54 = vrot.slane %v3497_v51, %v3478_v18 }
 0x162   :  { %1974 = vmatpush1.bf16.msra.mxu0 %v3072_v55  ;;  %2056 = vmatpush1.bf16.msra.mxu1 %v3075_v56 }
 0x163   :  { %1975 = vmatprep.subr.bf16.mxu0 %v3080_v57  ;;  %2057 = vmatprep.subr.bf16.mxu1 %v3083_v58 }
 0x166   :  { %1976 = vmatpush1.bf16.msra.mxu0 %v3078_v59  ;;  %2058 = vmatpush1.bf16.msra.mxu1 %v3081_v60 }
 0x167   :  { %1977 = vmatprep.subr.bf16.mxu0 %v3086_v61  ;;  %2059 = vmatprep.subr.bf16.mxu1 %v3089_v62 }
 0x16a   :  { %1978 = vmatpush1.bf16.msra.mxu0 %v3084_v63  ;;  %2060 = vmatpush1.bf16.msra.mxu1 %v3087_v0 }
 0x16b   :  { %1979 = vmatprep.subr.bf16.mxu0 %v3092_v1  ;;  %2061 = vmatprep.subr.bf16.mxu1 %v3095_v2 }
 0x16e   :  { %1980 = vmatpush1.bf16.msra.mxu0 %v3090_v3  ;;  %2062 = vmatpush1.bf16.msra.mxu1 %v3093_v4 }
 0x16f   :  { %1981 = vmatprep.subr.bf16.mxu0 %v3098_v5  ;;  %2063 = vmatprep.subr.bf16.mxu1 %v3101_v6  ;;  %v3156_v6 = vld [vmem:[#allocation4 + $0x200] ss:$16 sps:$4 sm:$0xff]  }
 0x172   :  { %1982 = vmatpush1.bf16.msra.mxu0 %v3096_v7  ;;  %2064 = vmatpush1.bf16.msra.mxu1 %v3099_v8  ;;  %v3159_v7 = vld [vmem:[#allocation4 + $0x208] ss:$16 sps:$4 sm:$0xff]  }
 0x173   :  { %1983 = vmatprep.subr.bf16.mxu0 %v3104_v9  ;;  %2065 = vmatprep.subr.bf16.mxu1 %v3107_v10  ;;  %v3164_v9 = vld [vmem:[#allocation4 + $0x224] ss:$16 sps:$4 sm:$0xff]   ;;  %v3167_v10 = vld [vmem:[#allocation4 + $0x22c] ss:$16 sps:$4 sm:$0xff]  }
 0x176   :  { %1984 = vmatpush1.bf16.msra.mxu0 %v3102_v11  ;;  %2066 = vmatpush1.bf16.msra.mxu1 %v3105_v12  ;;  %v3162_v12 = vld [vmem:[#allocation4 + $0x220] ss:$16 sps:$4 sm:$0xff]  }
 0x177   :  { %1985 = vmatprep.subr.bf16.mxu0 %v3110_v13  ;;  %2067 = vmatprep.subr.bf16.mxu1 %v3113_v19  ;;  %v3165_v13 = vld [vmem:[#allocation4 + $0x228] ss:$16 sps:$4 sm:$0xff]   ;;  %v3170_v19 = vld [vmem:[#allocation4 + $0x244] ss:$16 sps:$4 sm:$0xff]  }
 0x17a   :  { %1986 = vmatpush1.bf16.msra.mxu0 %v3108_v20  ;;  %2068 = vmatpush1.bf16.msra.mxu1 %v3111_v21  ;;  %v3173_v20 = vld [vmem:[#allocation4 + $0x24c] ss:$16 sps:$4 sm:$0xff]   ;;  %v3168_v21 = vld [vmem:[#allocation4 + $0x240] ss:$16 sps:$4 sm:$0xff]  }
 0x17b   :  { %1987 = vmatprep.subr.bf16.mxu0 %v3116_v22  ;;  %2069 = vmatprep.subr.bf16.mxu1 %v3119_v23  ;;  %v3171_v22 = vld [vmem:[#allocation4 + $0x248] ss:$16 sps:$4 sm:$0xff]   ;;  %v3176_v23 = vld [vmem:[#allocation4 + $0x264] ss:$16 sps:$4 sm:$0xff]  }
 0x17e   :  { %1988 = vmatpush1.bf16.msra.mxu0 %v3114_v24  ;;  %2070 = vmatpush1.bf16.msra.mxu1 %v3117_v26  ;;  %v3179_v24 = vld [vmem:[#allocation4 + $0x26c] ss:$16 sps:$4 sm:$0xff]   ;;  %v3174_v26 = vld [vmem:[#allocation4 + $0x260] ss:$16 sps:$4 sm:$0xff]  }
 0x17f   :  { %1989 = vmatprep.subr.bf16.mxu0 %v3122_v27  ;;  %2071 = vmatprep.subr.bf16.mxu1 %v3125_v28  ;;  %v3177_v27 = vld [vmem:[#allocation4 + $0x268] ss:$16 sps:$4 sm:$0xff]   ;;  %v3182_v28 = vld [vmem:[#allocation4 + $0x284] ss:$16 sps:$4 sm:$0xff]  }
 0x182   :  { %1990 = vmatpush1.bf16.msra.mxu0 %v3120_v29  ;;  %2072 = vmatpush1.bf16.msra.mxu1 %v3123_v30  ;;  %v3185_v29 = vld [vmem:[#allocation4 + $0x28c] ss:$16 sps:$4 sm:$0xff]   ;;  %v3180_v30 = vld [vmem:[#allocation4 + $0x280] ss:$16 sps:$4 sm:$0xff]  }
 0x183   :  { %1991 = vmatprep.subr.bf16.mxu0 %v3128_v32  ;;  %2073 = vmatprep.subr.bf16.mxu1 %v3131_v33  ;;  %v3183_v32 = vld [vmem:[#allocation4 + $0x288] ss:$16 sps:$4 sm:$0xff]   ;;  %v3188_v33 = vld [vmem:[#allocation4 + $0x2a4] ss:$16 sps:$4 sm:$0xff]  }
 0x186   :  { %1992 = vmatpush1.bf16.msra.mxu0 %v3126_v34  ;;  %2074 = vmatpush1.bf16.msra.mxu1 %v3129_v35  ;;  %v3191_v34 = vld [vmem:[#allocation4 + $0x2ac] ss:$16 sps:$4 sm:$0xff]   ;;  %v3186_v35 = vld [vmem:[#allocation4 + $0x2a0] ss:$16 sps:$4 sm:$0xff]  }
 0x187   :  { %1993 = vmatprep.subr.bf16.mxu0 %v3134_v36  ;;  %2075 = vmatprep.subr.bf16.mxu1 %v3137_v37  ;;  %v3189_v36 = vld [vmem:[#allocation4 + $0x2a8] ss:$16 sps:$4 sm:$0xff]   ;;  %v3194_v37 = vld [vmem:[#allocation4 + $0x2c4] ss:$16 sps:$4 sm:$0xff]  }
 0x18a   :  { %1994 = vmatpush1.bf16.msra.mxu0 %v3132_v38  ;;  %2076 = vmatpush1.bf16.msra.mxu1 %v3135_v39  ;;  %v3197_v38 = vld [vmem:[#allocation4 + $0x2cc] ss:$16 sps:$4 sm:$0xff]   ;;  %v3192_v39 = vld [vmem:[#allocation4 + $0x2c0] ss:$16 sps:$4 sm:$0xff]  }
 0x18b   :  { %1995 = vmatprep.subr.bf16.mxu0 %v3140_v40  ;;  %2077 = vmatprep.subr.bf16.mxu1 %v3143_v14  ;;  %v3195_v40 = vld [vmem:[#allocation4 + $0x2c8] ss:$16 sps:$4 sm:$0xff]   ;;  %v3200_v14 = vld [vmem:[#allocation4 + $0x2e4] ss:$16 sps:$4 sm:$0xff]  }
 0x18e   :  { %1996 = vmatpush1.bf16.msra.mxu0 %v3138_v41  ;;  %2078 = vmatpush1.bf16.msra.mxu1 %v3141_v42  ;;  %v3203_v41 = vld [vmem:[#allocation4 + $0x2ec] ss:$16 sps:$4 sm:$0xff]   ;;  %v3198_v42 = vld [vmem:[#allocation4 + $0x2e0] ss:$16 sps:$4 sm:$0xff]  }
 0x18f   :  { %1997 = vmatprep.subr.bf16.mxu0 %v3146_v43  ;;  %2079 = vmatprep.subr.bf16.mxu1 %v3149_v44  ;;  %v3201_v43 = vld [vmem:[#allocation4 + $0x2e8] ss:$16 sps:$4 sm:$0xff]   ;;  %v3206_v44 = vld [vmem:[#allocation4 + $0x304] ss:$16 sps:$4 sm:$0xff]  }
 0x192   :  { %1998 = vmatpush1.bf16.msra.mxu0 %v3144_v45  ;;  %2080 = vmatpush1.bf16.msra.mxu1 %v3147_v16  ;;  %v3209_v45 = vld [vmem:[#allocation4 + $0x30c] ss:$16 sps:$4 sm:$0xff]   ;;  %v3204_v16 = vld [vmem:[#allocation4 + $0x300] ss:$16 sps:$4 sm:$0xff]  }
 0x193   :  { %1999 = vmatprep.subr.bf16.mxu0 %v3152_v46  ;;  %2081 = vmatprep.subr.bf16.mxu1 %v3155_v47  ;;  %v3207_v46 = vld [vmem:[#allocation4 + $0x308] ss:$16 sps:$4 sm:$0xff]   ;;  %v3212_v47 = vld [vmem:[#allocation4 + $0x324] ss:$16 sps:$4 sm:$0xff]  }
 0x196   :  { %2000 = vmatpush1.bf16.msra.mxu0 %v3150_v48  ;;  %2082 = vmatpush1.bf16.msra.mxu1 %v3153_v49  ;;  %v3215_v48 = vld [vmem:[#allocation4 + $0x32c] ss:$16 sps:$4 sm:$0xff]   ;;  %v3210_v49 = vld [vmem:[#allocation4 + $0x320] ss:$16 sps:$4 sm:$0xff]  }
 0x197   :  { %2010 = vmatprep.subr.bf16.mxu0 %v3158_v25  ;;  %2092 = vmatprep.subr.bf16.mxu1 %v3161_v50  ;;  %v3213_v25 = vld [vmem:[#allocation4 + $0x328] ss:$16 sps:$4 sm:$0xff]   ;;  %v3218_v50 = vld [vmem:[#allocation4 + $0x344] ss:$16 sps:$4 sm:$0xff]  }
 0x22c   :  { %v1082_v55 = vpop.f32.mrb[4].mxu0  ;;  %v3505_v56 = vpop.f32.mrb[4].mxu1 }
 0x22d   :  { %v2832_v57 = vadd.f32 %v1082_v55, %v350_v52  ;;  %v1084_v58 = vpop.f32.mrb[5].mxu0  ;;  %v1166_v59 = vpop.f32.mrb[5].mxu1  ;;  %v3221_v52 = vld [vmem:[#allocation4 + $0x34c] ss:$16 sps:$4 sm:$0xff]   ;;  %v3224_v55 = vld [vmem:[#allocation4 + $0x364] ss:$16 sps:$4 sm:$0xff]  }
 0x22e   :  { %v2833_v60 = vadd.f32 %v1084_v58, %v354_v53  ;;  %v2835_v61 = vadd.f32 %v1166_v59, %v362_v54  ;;  %v1086_v62 = vpop.f32.mrb[6].mxu0  ;;  %v1168_v63 = vpop.f32.mrb[6].mxu1  ;;  %v3216_v53 = vld [vmem:[#allocation4 + $0x340] ss:$16 sps:$4 sm:$0xff]   ;;  %v3219_v54 = vld [vmem:[#allocation4 + $0x348] ss:$16 sps:$4 sm:$0xff]  }
 0x22f   :  { %v1171_v0 = vmax.f32 %v2832_v57, 0.0  ;;  %v1087_v1 = vpop.f32.mrb[7].mxu0  ;;  %v1169_v2 = vpop.f32.mrb[7].mxu1  ;;  %v3227_v57 = vld [vmem:[#allocation4 + $0x36c] ss:$16 sps:$4 sm:$0xff]  }
 0x230   :  { %v1172_v3 = vmax.f32 %v2833_v60, 0.0  ;;  %v1174_v4 = vmax.f32 %v2835_v61, 0.0  ;;  %v3222_v58 = vld [vmem:[#allocation4 + $0x360] ss:$16 sps:$4 sm:$0xff]   ;;  %v3225_v59 = vld [vmem:[#allocation4 + $0x368] ss:$16 sps:$4 sm:$0xff]  }
 0x231   :  { %v1175_v8 = vpack.c.bf16 %v1171_v0, %v1171_v0  ;;  %v3230_v60 = vld [vmem:[#allocation4 + $0x384] ss:$16 sps:$4 sm:$0xff]   ;;  %v3233_v61 = vld [vmem:[#allocation4 + $0x38c] ss:$16 sps:$4 sm:$0xff]   ;;  %v3228_v62 = vld [vmem:[#allocation4 + $0x380] ss:$16 sps:$4 sm:$0xff]  }
 0x232   :  { %v1176_v5 = vpack.c.bf16 %v1172_v3, %v1172_v3  ;;  %v1178_v11 = vpack.c.bf16 %v1174_v4, %v1174_v4  ;;  %v3231_v63 = vld [vmem:[#allocation4 + $0x388] ss:$16 sps:$4 sm:$0xff]   ;;  %v3236_v0 = vld [vmem:[#allocation4 + $0x3a4] ss:$16 sps:$4 sm:$0xff]   ;;  %v3239_v1 = vld [vmem:[#allocation4 + $0x3ac] ss:$16 sps:$4 sm:$0xff]   ;;  %v358_v4 = vrot.slane %v3497_v51, %v3489_v31 }
 0x233   :  { %v3234_v2 = vld [vmem:[#allocation4 + $0x3a0] ss:$16 sps:$4 sm:$0xff]   ;;  %v3237_v3 = vld [vmem:[#allocation4 + $0x3a8] ss:$16 sps:$4 sm:$0xff]  }
 0x234   :  { %2001 = vmatprep.mubr.bf16.mxu0 %v1176_v5  ;;  %2083 = vmatprep.mubr.bf16.mxu1 %v1176_v5  ;;  %v3242_v5 = vld [vmem:[#allocation4 + $0x3c4] ss:$16 sps:$4 sm:$0xff]  }
 0x235   :  { %2002 = vmatmul.mubr.bf16.vlgmr.msra.gmra.mrb[8].mxu0 %v1175_v8  ;;  %2084 = vmatmul.mubr.bf16.vlgmr.msra.gmra.mrb[8].mxu1 %v1175_v8  ;;  %v3243_v8 = vld [vmem:[#allocation4 + $0x3c8] ss:$16 sps:$4 sm:$0xff]   ;;  %v3252_v51 = vld [vmem:[#allocation6 + $0x40] sm:$0xff]  }
 0x236   :  { %2011 = vmatpush1.bf16.msra.mxu0 %v3156_v6  ;;  %2093 = vmatpush1.bf16.msra.mxu1 %v3159_v7  ;;  %v3245_v6 = vld [vmem:[#allocation4 + $0x3cc] ss:$16 sps:$4 sm:$0xff]   ;;  %v3240_v7 = vld [vmem:[#allocation4 + $0x3c0] ss:$16 sps:$4 sm:$0xff]  }
 0x237   :  { %2042 = vmatprep.mubr.bf16.mxu0 %v1178_v11  ;;  %2124 = vmatprep.mubr.bf16.mxu1 %v1178_v11  ;;  %v3251_v11 = vld [vmem:[#allocation4 + $0x3ec] ss:$16 sps:$4 sm:$0xff]  }
 0x238   :  { %2012 = vmatprep.subr.bf16.mxu0 %v3164_v9  ;;  %2094 = vmatprep.subr.bf16.mxu1 %v3167_v10  ;;  %v2834_v9 = vadd.f32 %v3505_v56, %v358_v4  ;;  %v3248_v10 = vld [vmem:[#allocation4 + $0x3e4] ss:$16 sps:$4 sm:$0xff]   ;;  %v3256_v56 = vld [vmem:[#allocation6 + $0x48] sm:$0xff]  }
 0x23a   :  { %2013 = vmatpush1.bf16.msra.mxu0 %v3162_v12  ;;  %2095 = vmatpush1.bf16.msra.mxu1 %v3165_v13  ;;  %v3246_v12 = vld [vmem:[#allocation4 + $0x3e0] ss:$16 sps:$4 sm:$0xff]   ;;  %v3249_v13 = vld [vmem:[#allocation4 + $0x3e8] ss:$16 sps:$4 sm:$0xff]  }
 0x23b   :  { %2014 = vmatprep.subr.bf16.mxu0 %v3170_v19  ;;  %2096 = vmatprep.subr.bf16.mxu1 %v3173_v20  ;;  %v1173_v19 = vmax.f32 %v2834_v9, 0.0  ;;  %v3253_v20 = vld [vmem:[#allocation6 + $0xc0] sm:$0xff]  }
 0x23e   :  { %2015 = vmatpush1.bf16.msra.mxu0 %v3168_v21  ;;  %2097 = vmatpush1.bf16.msra.mxu1 %v3171_v22  ;;  %v3254_v21 = vld [vmem:[#allocation6] sm:$0xff]  }
 0x23f   :  { %2016 = vmatprep.subr.bf16.mxu0 %v3176_v23  ;;  %2098 = vmatprep.subr.bf16.mxu1 %v3179_v24  ;;  %v3255_v22 = vld [vmem:[#allocation6 + $0x80] sm:$0xff]   ;;  %v1177_v23 = vpack.c.bf16 %v1173_v19, %v1173_v19  ;;  %v3257_v24 = vld [vmem:[#allocation6 + $0xc8] sm:$0xff]  }
 0x242   :  { %2017 = vmatpush1.bf16.msra.mxu0 %v3174_v26  ;;  %2099 = vmatpush1.bf16.msra.mxu1 %v3177_v27  ;;  %v3258_v26 = vld [vmem:[#allocation6 + $0x8] sm:$0xff]  }
 0x243   :  { %2018 = vmatprep.subr.bf16.mxu0 %v3182_v28  ;;  %2100 = vmatprep.subr.bf16.mxu1 %v3185_v29  ;;  %v3259_v27 = vld [vmem:[#allocation6 + $0x88] sm:$0xff]   ;;  %v3260_v28 = vld [vmem:[#allocation6 + $0x50] sm:$0xff]  }
 0x244   :  { %v3261_v29 = vld [vmem:[#allocation6 + $0xd0] sm:$0xff]  }
 0x246   :  { %2019 = vmatpush1.bf16.msra.mxu0 %v3180_v30  ;;  %2101 = vmatpush1.bf16.msra.mxu1 %v3183_v32  ;;  %v3262_v30 = vld [vmem:[#allocation6 + $0x10] sm:$0xff]  }
 0x247   :  { %2020 = vmatprep.subr.bf16.mxu0 %v3188_v33  ;;  %2102 = vmatprep.subr.bf16.mxu1 %v3191_v34  ;;  %v3263_v32 = vld [vmem:[#allocation6 + $0x90] sm:$0xff]   ;;  %v3264_v33 = vld [vmem:[#allocation6 + $0x58] sm:$0xff]  }
 0x248   :  { %v3265_v34 = vld [vmem:[#allocation6 + $0xd8] sm:$0xff]  }
 0x24a   :  { %2021 = vmatpush1.bf16.msra.mxu0 %v3186_v35  ;;  %2103 = vmatpush1.bf16.msra.mxu1 %v3189_v36  ;;  %v3266_v35 = vld [vmem:[#allocation6 + $0x18] sm:$0xff]  }
 0x24b   :  { %2022 = vmatprep.subr.bf16.mxu0 %v3194_v37  ;;  %2104 = vmatprep.subr.bf16.mxu1 %v3197_v38  ;;  %v3267_v36 = vld [vmem:[#allocation6 + $0x98] sm:$0xff]   ;;  %v3268_v37 = vld [vmem:[#allocation6 + $0x60] sm:$0xff]  }
 0x24c   :  { %v3269_v38 = vld [vmem:[#allocation6 + $0xe0] sm:$0xff]  }
 0x24e   :  { %2023 = vmatpush1.bf16.msra.mxu0 %v3192_v39  ;;  %2105 = vmatpush1.bf16.msra.mxu1 %v3195_v40  ;;  %v3270_v39 = vld [vmem:[#allocation6 + $0x20] sm:$0xff]  }
 0x24f   :  { %2024 = vmatprep.subr.bf16.mxu0 %v3200_v14  ;;  %2106 = vmatprep.subr.bf16.mxu1 %v3203_v41  ;;  %v3271_v40 = vld [vmem:[#allocation6 + $0xa0] sm:$0xff]   ;;  %v3272_v14 = vld [vmem:[#allocation6 + $0x68] sm:$0xff]  }
 0x250   :  { %v3273_v41 = vld [vmem:[#allocation6 + $0xe8] sm:$0xff]  }
 0x252   :  { %2025 = vmatpush1.bf16.msra.mxu0 %v3198_v42  ;;  %2107 = vmatpush1.bf16.msra.mxu1 %v3201_v43  ;;  %v3274_v42 = vld [vmem:[#allocation6 + $0x28] sm:$0xff]  }
 0x253   :  { %2026 = vmatprep.subr.bf16.mxu0 %v3206_v44  ;;  %2108 = vmatprep.subr.bf16.mxu1 %v3209_v45  ;;  %v3275_v43 = vld [vmem:[#allocation6 + $0xa8] sm:$0xff]   ;;  %v3276_v44 = vld [vmem:[#allocation6 + $0x70] sm:$0xff]  }
 0x254   :  { %v3277_v45 = vld [vmem:[#allocation6 + $0xf0] sm:$0xff]  }
 0x256   :  { %2027 = vmatpush1.bf16.msra.mxu0 %v3204_v16  ;;  %2109 = vmatpush1.bf16.msra.mxu1 %v3207_v46  ;;  %v3278_v16 = vld [vmem:[#allocation6 + $0x30] sm:$0xff]  }
 0x257   :  { %2028 = vmatprep.subr.bf16.mxu0 %v3212_v47  ;;  %2110 = vmatprep.subr.bf16.mxu1 %v3215_v48  ;;  %v3279_v46 = vld [vmem:[#allocation6 + $0xb0] sm:$0xff]   ;;  %v3280_v47 = vld [vmem:[#allocation6 + $0x78] sm:$0xff]  }
 0x258   :  { %v3281_v48 = vld [vmem:[#allocation6 + $0xf8] sm:$0xff]  }
 0x25a   :  { %2029 = vmatpush1.bf16.msra.mxu0 %v3210_v49  ;;  %2111 = vmatpush1.bf16.msra.mxu1 %v3213_v25  ;;  %v3282_v49 = vld [vmem:[#allocation6 + $0x38] sm:$0xff]  }
 0x25b   :  { %2030 = vmatprep.subr.bf16.mxu0 %v3218_v50  ;;  %2112 = vmatprep.subr.bf16.mxu1 %v3221_v52  ;;  %v3283_v25 = vld [vmem:[#allocation6 + $0xb8] sm:$0xff]   ;;  %v1307_v50 = vld [vmem:[%s3529_s6] sm:$0xf] }
 0x25c   :  { %v1312_v52 = vrot.slane %v1307_v50, %v3467_v15 }
 0x25e   :  { %2031 = vmatpush1.bf16.msra.mxu0 %v3216_v53  ;;  %2113 = vmatpush1.bf16.msra.mxu1 %v3219_v54  ;;  %v1320_v53 = vrot.slane %v1307_v50, %v3489_v31  ;;  %v1316_v54 = vrot.slane %v1307_v50, %v3475_v17 }
 0x25f   :  { %2032 = vmatprep.subr.bf16.mxu0 %v3224_v55  ;;  %2114 = vmatprep.subr.bf16.mxu1 %v3227_v57  ;;  %v1324_v55 = vrot.slane %v1307_v50, %v3478_v18 }
 0x262   :  { %2033 = vmatpush1.bf16.msra.mxu0 %v3222_v58  ;;  %2115 = vmatpush1.bf16.msra.mxu1 %v3225_v59 }
 0x263   :  { %2034 = vmatprep.subr.bf16.mxu0 %v3230_v60  ;;  %2116 = vmatprep.subr.bf16.mxu1 %v3233_v61 }
 0x266   :  { %2035 = vmatpush1.bf16.msra.mxu0 %v3228_v62  ;;  %2117 = vmatpush1.bf16.msra.mxu1 %v3231_v63 }
 0x267   :  { %2036 = vmatprep.subr.bf16.mxu0 %v3236_v0  ;;  %2118 = vmatprep.subr.bf16.mxu1 %v3239_v1 }
 0x26a   :  { %2037 = vmatpush1.bf16.msra.mxu0 %v3234_v2  ;;  %2119 = vmatpush1.bf16.msra.mxu1 %v3237_v3 }
 0x26b   :  { %2038 = vmatprep.subr.bf16.mxu0 %v3242_v5  ;;  %2120 = vmatprep.subr.bf16.mxu1 %v3245_v6 }
 0x26e   :  { %2039 = vmatpush1.bf16.msra.mxu0 %v3240_v7  ;;  %2121 = vmatpush1.bf16.msra.mxu1 %v3243_v8 }
 0x26f   :  { %2040 = vmatprep.subr.bf16.mxu0 %v3248_v10  ;;  %2122 = vmatprep.subr.bf16.mxu1 %v3251_v11  ;;  %v2755_v11 = vld [vmem:[%s3531_s8] ss:$0 sm:$0xff] }
 0x272   :  { %2041 = vmatpush1.bf16.msra.mxu0 %v3246_v12  ;;  %2123 = vmatpush1.bf16.msra.mxu1 %v3249_v13 }
 0x273   :  { %2788 = vmatprep.subr.bf16.mxu0 %v3252_v51  ;;  %2810 = vmatprep.subr.bf16.mxu1 %v3253_v20 }
 0x275   :  { %2043 = vmatmul.mubr.bf16.vlgmr.msra.gmra.mrb[8].mxu0 %v1177_v23  ;;  %2125 = vmatmul.mubr.bf16.vlgmr.msra.gmra.mrb[8].mxu1 %v1177_v23 }
 0x276   :  { %2789 = vmatpush3.bf16.msra.mxu0 %v3254_v21  ;;  %2811 = vmatpush3.bf16.msra.mxu1 %v3255_v22 }
 0x277   :  { %2790 = vmatprep.subr.bf16.mxu0 %v3256_v56  ;;  %2812 = vmatprep.subr.bf16.mxu1 %v3257_v24 }
 0x27a   :  { %2791 = vmatpush3.bf16.msra.mxu0 %v3258_v26  ;;  %2813 = vmatpush3.bf16.msra.mxu1 %v3259_v27 }
 0x27b   :  { %2792 = vmatprep.subr.bf16.mxu0 %v3260_v28  ;;  %2814 = vmatprep.subr.bf16.mxu1 %v3261_v29 }
 0x27e   :  { %2793 = vmatpush3.bf16.msra.mxu0 %v3262_v30  ;;  %2815 = vmatpush3.bf16.msra.mxu1 %v3263_v32 }
 0x27f   :  { %2794 = vmatprep.subr.bf16.mxu0 %v3264_v33  ;;  %2816 = vmatprep.subr.bf16.mxu1 %v3265_v34 }
 0x282   :  { %2795 = vmatpush3.bf16.msra.mxu0 %v3266_v35  ;;  %2817 = vmatpush3.bf16.msra.mxu1 %v3267_v36 }
 0x283   :  { %2796 = vmatprep.subr.bf16.mxu0 %v3268_v37  ;;  %2818 = vmatprep.subr.bf16.mxu1 %v3269_v38 }
 0x286   :  { %2797 = vmatpush3.bf16.msra.mxu0 %v3270_v39  ;;  %2819 = vmatpush3.bf16.msra.mxu1 %v3271_v40 }
 0x287   :  { %2798 = vmatprep.subr.bf16.mxu0 %v3272_v14  ;;  %2820 = vmatprep.subr.bf16.mxu1 %v3273_v41 }
 0x28a   :  { %2799 = vmatpush3.bf16.msra.mxu0 %v3274_v42  ;;  %2821 = vmatpush3.bf16.msra.mxu1 %v3275_v43 }
 0x28b   :  { %2800 = vmatprep.subr.bf16.mxu0 %v3276_v44  ;;  %2822 = vmatprep.subr.bf16.mxu1 %v3277_v45 }
 0x28e   :  { %2801 = vmatpush3.bf16.msra.mxu0 %v3278_v16  ;;  %2823 = vmatpush3.bf16.msra.mxu1 %v3279_v46 }
 0x28f   :  { %2802 = vmatprep.subr.bf16.mxu0 %v3280_v47  ;;  %2824 = vmatprep.subr.bf16.mxu1 %v3281_v48 }
 0x292   :  { %2803 = vmatpush3.bf16.msra.mxu0 %v3282_v49  ;;  %2825 = vmatpush3.bf16.msra.mxu1 %v3283_v25 }
 0x348   :  { %v2044_v57 = vpop.f32.mrb[8].mxu0  ;;  %v2126_v58 = vpop.f32.mrb[8].mxu1 }
 0x349   :  { %v2836_v59 = vadd.f32 %v2044_v57, %v1312_v52  ;;  %v2838_v60 = vadd.f32 %v2126_v58, %v1320_v53  ;;  %v2046_v61 = vpop.f32.mrb[9].mxu0  ;;  %v2128_v62 = vpop.f32.mrb[9].mxu1 }
 0x34a   :  { %v2837_v63 = vadd.f32 %v2046_v61, %v1316_v54  ;;  %v2839_v0 = vadd.f32 %v2128_v62, %v1324_v55  ;;  %v2048_v1 = vpop.f32.mrb[10].mxu0  ;;  %v2130_v2 = vpop.f32.mrb[10].mxu1 }
 0x34b   :  { %v2133_v3 = vmax.f32 %v2836_v59, 0.0  ;;  %v2135_v4 = vmax.f32 %v2838_v60, 0.0  ;;  %v2049_v5 = vpop.f32.mrb[11].mxu0  ;;  %v2131_v15 = vpop.f32.mrb[11].mxu1 }
 0x34c   :  { %v2134_v6 = vmax.f32 %v2837_v63, 0.0  ;;  %v2136_v31 = vmax.f32 %v2839_v0, 0.0 }
 0x34d   :  { %v2137_v8 = vpack.c.bf16 %v2133_v3, %v2133_v3  ;;  %v2139_v18 = vpack.c.bf16 %v2135_v4, %v2135_v4 }
 0x34e   :  { %v2138_v7 = vpack.c.bf16 %v2134_v6, %v2134_v6  ;;  %v2140_v17 = vpack.c.bf16 %v2136_v31, %v2136_v31 }
 0x350   :  { %2436 = vmatprep.mubr.bf16.mxu0 %v2138_v7  ;;  %2476 = vmatprep.mubr.bf16.mxu1 %v2140_v17 }
 0x351   :  { %2437 = vmatmul.mubr.bf16.vlgmr.msra.gmra.mrb[12].mxu0 %v2137_v8  ;;  %2477 = vmatmul.mubr.bf16.vlgmr.msra.gmra.mrb[12].mxu1 %v2139_v18 }
 0x424   :  { %v2804_v9 = vpop.f32.mrb[12].mxu0  ;;  %v2826_v10 = vpop.f32.mrb[12].mxu1 }
 0x425   :  { %v2805_v12 = vpop.f32.mrb[13].mxu0  ;;  %v2827_v13 = vpop.f32.mrb[13].mxu1 }
 0x426   :  { %v2806_v19 = vadd.f32 %v2805_v12, %v2804_v9  ;;  %v2828_v51 = vadd.f32 %v2827_v13, %v2826_v10  ;;  %v2807_v20 = vpop.f32.mrb[14].mxu0  ;;  %v2829_v21 = vpop.f32.mrb[14].mxu1 }
 0x427   :  { %v2808_v22 = vpop.f32.mrb[15].mxu0  ;;  %v2830_v23 = vpop.f32.mrb[15].mxu1 }
 0x428   :  { %v2439_v56 = vadd.f32 %v2806_v19, %v2755_v11 }
 0x42a   :  { %v2479_v24 = vadd.f32 %v2828_v51, %v2439_v56 }
 0x42c   :  { %2484 = vst [vmem:[%s3532_s9] sm:$0xff] %v2479_v24 }
 0x42d   :  { %2489 = vsyncpa [#allocation3], 1 }
 0x42e   :  { %2490 = vsyncpa [#allocation5], 1 }

</bundles_post_ra>
